<compile_context>
chip_gen: v7x
topology: tpu7x:2x2x1
jax: 0.10.0
libtpu: 0.0.40
codegen_flags: <defaults>
</compile_context>

<pallas_src>
import math
import jax
import jax.numpy as jnp
from jax.experimental import pallas as pl
from jax.experimental.pallas import tpu as pltpu

LANES = 128      # TPU lane width; feature dim is padded to this
SUBLANES = 8


def _round_up(x, m):
    return ((x + m - 1) // m) * m


def _pick_vmem_limit_bytes():
    # ~3/4 of physical VMEM, capped at 100 MiB: v5e/v6e -> ~96 MiB, v7x -> 48 MiB.
    try:
        cap = getattr(pltpu.get_tpu_info(), "vmem_capacity_bytes", None)
        if cap:
            return int(min(cap * 3 // 4, 100 * 1024 * 1024))
    except Exception:
        pass
    return 48 * 1024 * 1024


def _erf_f32(x):
    # f32 rational erf approximation (exact erf to f32 precision), VPU-only.
    alpha = (0.00022905065861350646, 0.0034082910107109506,
             0.050955695062380861, 0.18520832239976145, 1.128379143519084)
    beta = (-1.1791602954361697e-7, 2.3547966471313185e-5,
            0.0010179625278914885, 0.014070470171167667,
            0.11098505178285362, 0.49746925110067538, 1.0)
    x = jnp.clip(x, -3.832506856900711, 3.832506856900711)
    x2 = x * x
    p = jnp.zeros_like(x)
    for c in alpha:
        p = p * x2 + c
    q = jnp.zeros_like(x)
    for c in beta:
        q = q * x2 + c
    return (x * p) / q


# ----------------------------------------------------------------------------- kernel

def _make_gcmc_dst_kernel(d, n_rel, tile_n, edge_tile):
    """grid = (n_dst_blocks, n_relations, max_edge_tiles_per_block)."""
    pa_col, ra_col = d, d + 1
    inv_sqrt2 = 0.7071067811865476

    def kernel(tstart_ref, tcount_ref, dst_ref, scale_ref, srch_ref, rfeat_ref,
               wpack_ref, wfc_t_ref, bfc_ref, out_ref):
        b = pl.program_id(0)     # destination block
        r = pl.program_id(1)     # rating relation
        t = pl.program_id(2)     # edge tile within this (block, relation)

        # out_ref block index depends only on b -> VMEM-resident accumulator.
        @pl.when((r == 0) & (t == 0))
        def _init():
            out_ref[...] = jnp.zeros_like(out_ref)

        count = tcount_ref[b * n_rel + r]

        @pl.when(t < count)
        def _accumulate():
            rfeat = rfeat_ref[0]                                   # (TE, Dp)
            # one MXU matmul yields rf (cols [0, d)) plus pa / ra gate logits
            # (cols d, d+1 of the packed weight).  DEFAULT precision.
            z = jnp.dot(rfeat, wpack_ref[0],
                        preferred_element_type=jnp.float32)
            pa = jax.nn.sigmoid(z[:, pa_col:pa_col + 1])           # (TE, 1)
            ra = jax.nn.sigmoid(z[:, ra_col:ra_col + 1])           # (TE, 1)
            msg = srch_ref[0] * pa + z * ra                        # (TE, Dp)

            # Blocked scatter-sum: (TILE_N, TE) matrix built on the fly, with
            # the per-edge cj*ci scale folded into its values.  Edges outside
            # this dst block (boundary tiles) or padding (dst = -1, scale = 0)
            # match no row and contribute nothing.
            local_dst = dst_ref[0] - b * tile_n                    # (1, TE)
            rows = jax.lax.broadcasted_iota(jnp.int32, (tile_n, edge_tile), 0)
            scat = jnp.where(rows == local_dst, scale_ref[0], 0.0)
            out_ref[...] += jnp.dot(scat, msg,
                                    preferred_element_type=jnp.float32)

        # fused GELU (exact, erf) + biased Linear epilogue on the last step.
        @pl.when((r == pl.num_programs(1) - 1) & (t == pl.num_programs(2) - 1))
        def _finalize():
            x = out_ref[...]
            # defensively zero the gate-logit junk columns (>= d).
            cols = jax.lax.broadcasted_iota(jnp.int32, x.shape, 1)
            x = jnp.where(cols < d, x, 0.0)
            g = 0.5 * x * (1.0 + _erf_f32(x * inv_sqrt2))
            out_ref[...] = (jnp.dot(g, wfc_t_ref[...],
                                    preferred_element_type=jnp.float32)
                            + bfc_ref[...])

    return kernel


# ----------------------------------------------------------------------------- wrappers

def gcmc_dst_forward(tile_start, tile_count, dst_e, scale_e, srch_e, rfeat_e,
                     wpack, wfc_t, bfc, *, d, tile_n, edge_tile, max_tiles):
    """All ratings feeding one destination type + GELU + FC, one pallas_call."""
    n_rel, e_pad, dp = srch_e.shape
    n_blocks = tile_start.shape[0] // n_rel

    def _tile_idx(b, r, t, tstart, tcount):
        idx = b * n_rel + r
        c = tcount[idx]
        # clamp steps past this block's tile count to a valid (benign) tile.
        return tstart[idx] + jnp.minimum(t, jnp.maximum(c - 1, 0))

    feat_map = lambda b, r, t, ts, tc: (r, _tile_idx(b, r, t, ts, tc), 0)
    row_map = lambda b, r, t, ts, tc: (r, 0, _tile_idx(b, r, t, ts, tc))

    return pl.pallas_call(
        _make_gcmc_dst_kernel(d, n_rel, tile_n, edge_tile),
        out_shape=jax.ShapeDtypeStruct((n_blocks * tile_n, dp), jnp.float32),
        grid_spec=pltpu.PrefetchScalarGridSpec(
            num_scalar_prefetch=2,
            grid=(n_blocks, n_rel, max_tiles),
            in_specs=[
                pl.BlockSpec((1, 1, edge_tile), row_map),           # dst ids
                pl.BlockSpec((1, 1, edge_tile), row_map),           # cj*ci scale
                pl.BlockSpec((1, edge_tile, dp), feat_map),          # h_src[src]
                pl.BlockSpec((1, edge_tile, dp), feat_map),          # review_feat
                pl.BlockSpec((1, dp, dp), lambda b, r, t, *_: (r, 0, 0)),  # packed W
                pl.BlockSpec((dp, dp), lambda b, r, t, *_: (0, 0)),        # fc W^T
                pl.BlockSpec((1, dp), lambda b, r, t, *_: (0, 0)),         # fc bias
            ],
            out_specs=pl.BlockSpec((tile_n, dp), lambda b, r, t, *_: (b, 0)),
        ),
        compiler_params=pltpu.CompilerParams(
            dimension_semantics=("parallel", "arbitrary", "arbitrary"),
            vmem_limit_bytes=_pick_vmem_limit_bytes()),
    )(tile_start, tile_count, dst_e, scale_e, srch_e, rfeat_e, wpack, wfc_t, bfc)


def _build_relation_inputs(conv_params, graphs, src_key, dst_key, cj_key, ci_key,
                           *, d, dp, e_pad, edge_tile, tile_n, n_blocks):
    """Host-side O(E log E) sort + O(E*D) gathers + per-block tile ranges."""
    dst_l, scl_l, srch_l, rfe_l, wpk_l, ts_l, tc_l = ([] for _ in range(7))
    blk_lo = jnp.arange(n_blocks, dtype=jnp.int32) * tile_n
    blk_hi = blk_lo + tile_n
    for p, g in zip(conv_params, graphs):
        src = jnp.asarray(g[src_key], jnp.int32)
        dst = jnp.asarray(g[dst_key], jnp.int32)
        order = jnp.argsort(dst)                       # group edges by dst
        src, dst = src[order], dst[order]
        rfeat = g["review_feat"][order]
        e = int(src.shape[0])

        srch_l.append(jnp.zeros((e_pad, dp), jnp.float32)
                      .at[:e, :d].set(p["weight"][src]))
        rfe_l.append(jnp.zeros((e_pad, dp), jnp.float32).at[:e, :d].set(rfeat))
        scale = (g[cj_key][src] * g[ci_key][dst])[:, 0]
        # invariant: padded edges keep scale = 0 (they also keep dst = -1).
        scl_l.append(jnp.zeros((1, e_pad), jnp.float32).at[0, :e].set(scale))
        dst_l.append(jnp.full((1, e_pad), -1, jnp.int32).at[0, :e].set(dst))

        wpk = jnp.zeros((dp, dp), jnp.float32)
        wpk = wpk.at[:d, :d].set(p["review_w"].T)          # rf = rfeat @ W_rf^T
        wpk = wpk.at[:d, d].set(p["prob_score"][0])        # pa logit column
        wpk = wpk.at[:d, d + 1].set(p["review_score"][0])  # ra logit column
        wpk_l.append(wpk)

        # edge-tile range feeding each dst block (edges are sorted by dst).
        lo = jnp.searchsorted(dst, blk_lo, side="left")
        hi = jnp.searchsorted(dst, blk_hi, side="left")
        has = hi > lo
        ts_l.append(jnp.where(has, lo // edge_tile, 0).astype(jnp.int32))
        tc_l.append(jnp.where(has, (hi - 1) // edge_tile - lo // edge_tile + 1,
                              0).astype(jnp.int32))

    tile_start = jnp.stack(ts_l, axis=1).reshape(-1)    # flat index b*n_rel + r
    tile_count = jnp.stack(tc_l, axis=1).reshape(-1)
    max_tiles = max(int(jnp.max(tile_count)), 1)
    return (tile_start, tile_count, jnp.stack(dst_l), jnp.stack(scl_l),
            jnp.stack(srch_l), jnp.stack(rfe_l), jnp.stack(wpk_l), max_tiles)


def gcmc_layer_forward(params, graphs, n_user, n_movie, d, *,
                       edge_tile_target=2048, dst_tile_target=256):
    n_rel = len(graphs)
    dp = _round_up(max(d + 2, LANES), LANES)
    assert d + 2 <= dp
    e_max = max(int(g["src_u"].shape[0]) for g in graphs)
    edge_tile = min(_round_up(edge_tile_target, LANES), _round_up(e_max, LANES))
    e_pad = _round_up(e_max, edge_tile)

    def pad_fc(w, b):
        wt = jnp.zeros((dp, dp), jnp.float32).at[:d, :d].set(w.T)
        bb = jnp.zeros((1, dp), jnp.float32).at[0, :d].set(b)
        return wt, bb

    ufc_wt, ufc_b = pad_fc(params["ufc_w"], params["ufc_b"])
    ifc_wt, ifc_b = pad_fc(params["ifc_w"], params["ifc_b"])

    def run(conv_key, src_key, dst_key, cj_key, ci_key, n_dst, fc_wt, fc_b):
        tile_n = min(_round_up(dst_tile_target, SUBLANES),
                     _round_up(n_dst, SUBLANES))
        n_blocks = _round_up(n_dst, tile_n) // tile_n
        (ts, tc, dst_e, scl_e, srch_e, rfe_e, wpk, max_tiles) = \
            _build_relation_inputs(params[conv_key], graphs, src_key, dst_key,
                                   cj_key, ci_key, d=d, dp=dp, e_pad=e_pad,
                                   edge_tile=edge_tile, tile_n=tile_n,
                                   n_blocks=n_blocks)
        out = gcmc_dst_forward(ts, tc, dst_e, scl_e, srch_e, rfe_e, wpk,
                               fc_wt, fc_b, d=d, tile_n=tile_n,
                               edge_tile=edge_tile, max_tiles=max_tiles)
        return out[:n_dst, :d]

    # rating relations (user -> movie) feed the movie features
    ifeat = run("conv_fwd", "src_u", "dst_m", "cj_user", "ci_movie",
                n_movie, ifc_wt, ifc_b)
    # rev-rating relations (movie -> user) feed the user features
    ufeat = run("conv_rev", "dst_m", "src_u", "cj_movie", "ci_user",
                n_user, ufc_wt, ufc_b)
    return ufeat, ifeat


# ----------------------------------------------------------------------------- pure-JAX reference

def _ref_conv(p, rfeat, src_idx, dst_idx, cj, ci, n_dst):
    src_h = p["weight"][src_idx]
    pa = jax.nn.sigmoid(rfeat @ p["prob_score"].T)
    ra = jax.nn.sigmoid(rfeat @ p["review_score"].T)
    rf = rfeat @ p["review_w"].T
    msg = (src_h * pa + rf * ra) * cj[src_idx]
    agg = jnp.zeros((n_dst, src_h.shape[1]), jnp.float32).at[dst_idx].add(msg)
    return agg * ci


def _ref_layer(params, graphs, n_user, n_movie, d):
    user_agg = jnp.zeros((n_user, d), jnp.float32)
    movie_agg = jnp.zeros((n_movie, d), jnp.float32)
    for r, g in enumerate(graphs):
        movie_agg = movie_agg + _ref_conv(params["conv_fwd"][r], g["review_feat"],
                                          g["src_u"], g["dst_m"],
                                          g["cj_user"], g["ci_movie"], n_movie)
        user_agg = user_agg + _ref_conv(params["conv_rev"][r], g["review_feat"],
                                        g["dst_m"], g["src_u"],
                                        g["cj_movie"], g["ci_user"], n_user)
    ufeat = jax.nn.gelu(user_agg, approximate=False) @ params["ufc_w"].T + params["ufc_b"]
    ifeat = jax.nn.gelu(movie_agg, approximate=False) @ params["ifc_w"].T + params["ifc_b"]
    return ufeat, ifeat


# ----------------------------------------------------------------------------- setup

def _xavier(key, shape):
    fan_out, fan_in = shape
    bound = math.sqrt(6.0 / (fan_in + fan_out))
    return jax.random.uniform(key, shape, jnp.float32, -bound, bound)


if __name__ == "__main__":
    NU, NM, D, E = 16, 24, 32, 300         # user / movie nodes, out_units, edges
    RATINGS = 2                            # e.g. rating_vals = ["1", "2"]

    keys = list(jax.random.split(jax.random.PRNGKey(0), 128))
    ki = iter(keys)

    def make_conv_params(in_feats):
        return {
            "weight": _xavier(next(ki), (in_feats, D)),       # used as src features
            "prob_score": _xavier(next(ki), (1, D)),
            "review_score": _xavier(next(ki), (1, D)),
            "review_w": _xavier(next(ki), (D, D)),
        }

    params = {
        "conv_fwd": [make_conv_params(NU) for _ in range(RATINGS)],   # user -> movie
        "conv_rev": [make_conv_params(NM) for _ in range(RATINGS)],   # movie -> user
        "ufc_w": _xavier(next(ki), (D, D)),
        "ufc_b": jax.random.uniform(next(ki), (D,), jnp.float32,
                                    -1.0 / math.sqrt(D), 1.0 / math.sqrt(D)),
        "ifc_w": _xavier(next(ki), (D, D)),
        "ifc_b": jax.random.uniform(next(ki), (D,), jnp.float32,
                                    -1.0 / math.sqrt(D), 1.0 / math.sqrt(D)),
    }

    graphs = []
    for _ in range(RATINGS):
        graphs.append({
            "src_u": jax.random.randint(next(ki), (E,), 0, NU),
            "dst_m": jax.random.randint(next(ki), (E,), 0, NM),
            "review_feat": jax.random.normal(next(ki), (E, D), jnp.float32),
            "cj_user": jax.random.uniform(next(ki), (NU, 1), jnp.float32, 0.1, 1.0),
            "ci_user": jax.random.uniform(next(ki), (NU, 1), jnp.float32, 0.1, 1.0),
            "cj_movie": jax.random.uniform(next(ki), (NM, 1), jnp.float32, 0.1, 1.0),
            "ci_movie": jax.random.uniform(next(ki), (NM, 1), jnp.float32, 0.1, 1.0),
        })

    # small tiles in the demo so multiple dst blocks / edge tiles (and boundary
    # tiles shared between blocks) are actually exercised at small sizes.
    ufeat, ifeat = gcmc_layer_forward(params, graphs, NU, NM, D,
                                      edge_tile_target=128, dst_tile_target=8)
    jax.block_until_ready((ufeat, ifeat))

    ufeat_ref, ifeat_ref = _ref_layer(params, graphs, NU, NM, D)
    assert ufeat.shape == (NU, D) and ifeat.shape == (NM, D)
    # Tolerance re-baselined: kernel + reference matmuls both run at DEFAULT
    # MXU precision (bf16 passes) instead of HIGHEST, per the perf review.
    assert jnp.allclose(ufeat, ufeat_ref, atol=5e-2, rtol=5e-2)
    assert jnp.allclose(ifeat, ifeat_ref, atol=5e-2, rtol=5e-2)

    print("KERNEL_OK")
</pallas_src>

<mosaic_0001>
module attributes {stable_mosaic.version = 11 : i64} {
  func.func @kernel(%arg0: i32, %arg1: i32, %arg2: i32, %arg3: memref<6xi32, #tpu.memory_space<smem>>, %arg4: memref<6xi32, #tpu.memory_space<smem>>, %arg5: memref<1x1x128xi32, #tpu.memory_space<vmem>>, %arg6: memref<1x1x128xf32, #tpu.memory_space<vmem>>, %arg7: memref<1x128x128xf32, #tpu.memory_space<vmem>>, %arg8: memref<1x128x128xf32, #tpu.memory_space<vmem>>, %arg9: memref<1x128x128xf32, #tpu.memory_space<vmem>>, %arg10: memref<128x128xf32, #tpu.memory_space<vmem>>, %arg11: memref<1x128xf32, #tpu.memory_space<vmem>>, %arg12: memref<8x128xf32, #tpu.memory_space<vmem>>) attributes {dimension_semantics = [#tpu.dimension_semantics<parallel>, #tpu.dimension_semantics<arbitrary>, #tpu.dimension_semantics<arbitrary>], iteration_bounds = array<i64: 3, 2, 2>, scalar_prefetch = 2 : i64, scratch_operands = 0 : i64, tpu.core_type = #tpu.core_type<tc>, window_params = [{transform_indices = @transform_0, window_bounds = array<i64: 1, 1, 128>}, {transform_indices = @transform_1, window_bounds = array<i64: 1, 1, 128>}, {transform_indices = @transform_2, window_bounds = array<i64: 1, 128, 128>}, {transform_indices = @transform_3, window_bounds = array<i64: 1, 128, 128>}, {transform_indices = @transform_4, window_bounds = array<i64: 1, 128, 128>}, {pipeline_mode = #tpu.pipeline_mode<synchronous>, transform_indices = @transform_5, window_bounds = array<i64: 128, 128>}, {pipeline_mode = #tpu.pipeline_mode<synchronous>, transform_indices = @transform_6, window_bounds = array<i64: 1, 128>}, {transform_indices = @transform_7, window_bounds = array<i64: 8, 128>}]} {
    %c0_i32 = arith.constant 0 : i32
    %0 = arith.cmpi eq, %arg1, %c0_i32 : i32
    %c0_i32_0 = arith.constant 0 : i32
    %1 = arith.cmpi eq, %arg2, %c0_i32_0 : i32
    %2 = arith.andi %0, %1 : i1
    %3 = arith.extui %2 : i1 to i32
    %c0_i32_1 = arith.constant 0 : i32
    %4 = arith.cmpi ne, %3, %c0_i32_1 : i32
    scf.if %4 {
      %cst = arith.constant 0.000000e+00 : f32
      %17 = vector.broadcast %cst : f32 to vector<8x128xf32>
      %c0 = arith.constant 0 : index
      %c0_5 = arith.constant 0 : index
      %18 = vector.load %arg12[%c0, %c0_5] : memref<8x128xf32, #tpu.memory_space<vmem>>, vector<8x128xf32>
      tpu.vector_store %arg12[%c0, %c0_5], %17 {strides = array<i32>} : memref<8x128xf32, #tpu.memory_space<vmem>>, vector<8x128xf32>,
    } else {
    }
    %c2_i32 = arith.constant 2 : i32
    %5 = arith.muli %arg0, %c2_i32 : i32
    %6 = arith.addi %5, %arg1 : i32
    %7 = arith.index_cast %6 : i32 to index
    %8 = memref.load %arg4[%7] : memref<6xi32, #tpu.memory_space<smem>>
    %9 = arith.cmpi slt, %arg2, %8 : i32
    %10 = arith.extui %9 : i1 to i32
    %c0_i32_2 = arith.constant 0 : i32
    %11 = arith.cmpi ne, %10, %c0_i32_2 : i32
    scf.if %11 {
      %c0 = arith.constant 0 : index
      %c0_5 = arith.constant 0 : index
      %c0_6 = arith.constant 0 : index
      %17 = vector.load %arg8[%c0, %c0_5, %c0_6] : memref<1x128x128xf32, #tpu.memory_space<vmem>>, vector<1x128x128xf32>
      %18 = vector.shape_cast %17 : vector<1x128x128xf32> to vector<128x128xf32>
      %c0_7 = arith.constant 0 : index
      %c0_8 = arith.constant 0 : index
      %c0_9 = arith.constant 0 : index
      %19 = vector.load %arg9[%c0_7, %c0_8, %c0_9] : memref<1x128x128xf32, #tpu.memory_space<vmem>>, vector<1x128x128xf32>
      %20 = vector.shape_cast %19 : vector<1x128x128xf32> to vector<128x128xf32>
      %cst = arith.constant dense<0.000000e+00> : vector<128x128xf32>
      %21 = tpu.matmul %18, %20, %cst {dimension_numbers = #tpu.dot_dimension_numbers<[1], [0], [0], [1], [0, 0, 1, 1], [], []>} : vector<128x128xf32>, vector<128x128xf32>, vector<128x128xf32> -> vector<128x128xf32>
      %22 = vector.extract_strided_slice %21 {offsets = [0, 32], sizes = [128, 1], strides = [1, 1]} : vector<128x128xf32> to vector<128x1xf32>
      %23 = arith.negf %22 : vector<128x1xf32>
      %24 = math.exp %23 : vector<128x1xf32>
      %cst_10 = arith.constant 1.000000e+00 : f32
      %25 = vector.broadcast %cst_10 : f32 to vector<128x1xf32>
      %26 = arith.addf %25, %24 : vector<128x1xf32>
      %27 = arith.divf %25, %26 : vector<128x1xf32>
      %28 = vector.extract_strided_slice %21 {offsets = [0, 33], sizes = [128, 1], strides = [1, 1]} : vector<128x128xf32> to vector<128x1xf32>
      %29 = arith.negf %28 : vector<128x1xf32>
      %30 = math.exp %29 : vector<128x1xf32>
      %cst_11 = arith.constant 1.000000e+00 : f32
      %31 = vector.broadcast %cst_11 : f32 to vector<128x1xf32>
      %32 = arith.addf %31, %30 : vector<128x1xf32>
      %33 = arith.divf %31, %32 : vector<128x1xf32>
      %c0_12 = arith.constant 0 : index
      %c0_13 = arith.constant 0 : index
      %c0_14 = arith.constant 0 : index
      %34 = vector.load %arg7[%c0_12, %c0_13, %c0_14] : memref<1x128x128xf32, #tpu.memory_space<vmem>>, vector<1x128x128xf32>
      %35 = vector.shape_cast %34 : vector<1x128x128xf32> to vector<128x128xf32>
      %36 = vector.broadcast %27 : vector<128x1xf32> to vector<128x128xf32>
      %37 = arith.mulf %35, %36 : vector<128x128xf32>
      %38 = vector.broadcast %33 : vector<128x1xf32> to vector<128x128xf32>
      %39 = arith.mulf %21, %38 : vector<128x128xf32>
      %40 = arith.addf %37, %39 : vector<128x128xf32>
      %c0_15 = arith.constant 0 : index
      %c0_16 = arith.constant 0 : index
      %c0_17 = arith.constant 0 : index
      %41 = vector.load %arg5[%c0_15, %c0_16, %c0_17] : memref<1x1x128xi32, #tpu.memory_space<vmem>>, vector<1x1x128xi32>
      %42 = vector.shape_cast %41 : vector<1x1x128xi32> to vector<1x128xi32>
      %c8_i32 = arith.constant 8 : i32
      %43 = arith.muli %arg0, %c8_i32 : i32
      %44 = vector.broadcast %43 : i32 to vector<1x128xi32>
      %45 = arith.subi %42, %44 : vector<1x128xi32>
      %46 = tpu.iota {dimensions = array<i32: 0>} : vector<8x128xi32>
      %47 = vector.broadcast %45 : vector<1x128xi32> to vector<8x128xi32>
      %48 = arith.cmpi eq, %46, %47 : vector<8x128xi32>
      %c0_18 = arith.constant 0 : index
      %c0_19 = arith.constant 0 : index
      %c0_20 = arith.constant 0 : index
      %49 = vector.load %arg6[%c0_18, %c0_19, %c0_20] : memref<1x1x128xf32, #tpu.memory_space<vmem>>, vector<1x1x128xf32>
      %50 = vector.shape_cast %49 : vector<1x1x128xf32> to vector<1x128xf32>
      %cst_21 = arith.constant 0.000000e+00 : f32
      %51 = vector.shape_cast %50 : vector<1x128xf32> to vector<1x128xf32>
      %52 = vector.broadcast %51 : vector<1x128xf32> to vector<8x128xf32>
      %53 = vector.broadcast %cst_21 : f32 to vector<8x128xf32>
      %54 = arith.select %48, %52, %53 : vector<8x128xi1>, vector<8x128xf32>
      %c0_22 = arith.constant 0 : index
      %c0_23 = arith.constant 0 : index
      %55 = vector.load %arg12[%c0_22, %c0_23] : memref<8x128xf32, #tpu.memory_space<vmem>>, vector<8x128xf32>
      %cst_24 = arith.constant dense<0.000000e+00> : vector<8x128xf32>
      %56 = tpu.matmul %54, %40, %cst_24 {dimension_numbers = #tpu.dot_dimension_numbers<[1], [0], [0], [1], [0, 0, 1, 1], [], []>} : vector<8x128xf32>, vector<128x128xf32>, vector<8x128xf32> -> vector<8x128xf32>
      %57 = arith.addf %55, %56 : vector<8x128xf32>
      %c0_25 = arith.constant 0 : index
      %c0_26 = arith.constant 0 : index
      %58 = vector.load %arg12[%c0_25, %c0_26] : memref<8x128xf32, #tpu.memory_space<vmem>>, vector<8x128xf32>
      tpu.vector_store %arg12[%c0_25, %c0_26], %57 {strides = array<i32>} : memref<8x128xf32, #tpu.memory_space<vmem>>, vector<8x128xf32>,
    } else {
    }
    %c1_i32 = arith.constant 1 : i32
    %12 = arith.cmpi eq, %arg1, %c1_i32 : i32
    %c1_i32_3 = arith.constant 1 : i32
    %13 = arith.cmpi eq, %arg2, %c1_i32_3 : i32
    %14 = arith.andi %12, %13 : i1
    %15 = arith.extui %14 : i1 to i32
    %c0_i32_4 = arith.constant 0 : i32
    %16 = arith.cmpi ne, %15, %c0_i32_4 : i32
    scf.if %16 {
      %c0 = arith.constant 0 : index
      %c0_5 = arith.constant 0 : index
      %17 = vector.load %arg12[%c0, %c0_5] : memref<8x128xf32, #tpu.memory_space<vmem>>, vector<8x128xf32>
      %18 = tpu.iota {dimensions = array<i32: 1>} : vector<8x128xi32>
      %c32_i32 = arith.constant 32 : i32
      %19 = vector.broadcast %c32_i32 : i32 to vector<8x128xi32>
      %20 = arith.cmpi slt, %18, %19 : vector<8x128xi32>
      %cst = arith.constant 0.000000e+00 : f32
      %21 = vector.broadcast %cst : f32 to vector<8x128xf32>
      %22 = arith.select %20, %17, %21 : vector<8x128xi1>, vector<8x128xf32>
      %cst_6 = arith.constant 5.000000e-01 : f32
      %23 = vector.broadcast %cst_6 : f32 to vector<8x128xf32>
      %24 = arith.mulf %23, %22 : vector<8x128xf32>
      %cst_7 = arith.constant 0.707106769 : f32
      %25 = vector.broadcast %cst_7 : f32 to vector<8x128xf32>
      %26 = arith.mulf %22, %25 : vector<8x128xf32>
      %cst_8 = arith.constant -3.8325069 : f32
      %cst_9 = arith.constant 3.8325069 : f32
      %27 = vector.broadcast %cst_8 : f32 to vector<8x128xf32>
      %28 = arith.maximumf %27, %26 : vector<8x128xf32>
      %29 = vector.broadcast %cst_9 : f32 to vector<8x128xf32>
      %30 = arith.minimumf %29, %28 : vector<8x128xf32>
      %31 = arith.mulf %30, %30 : vector<8x128xf32>
      %cst_10 = arith.constant 0.000000e+00 : f32
      %32 = vector.broadcast %cst_10 : f32 to vector<8x128xf32>
      %33 = arith.mulf %32, %31 : vector<8x128xf32>
      %cst_11 = arith.constant 2.29050653E-4 : f32
      %34 = vector.broadcast %cst_11 : f32 to vector<8x128xf32>
      %35 = arith.addf %33, %34 : vector<8x128xf32>
      %36 = arith.mulf %35, %31 : vector<8x128xf32>
      %cst_12 = arith.constant 0.00340829091 : f32
      %37 = vector.broadcast %cst_12 : f32 to vector<8x128xf32>
      %38 = arith.addf %36, %37 : vector<8x128xf32>
      %39 = arith.mulf %38, %31 : vector<8x128xf32>
      %cst_13 = arith.constant 0.0509556942 : f32
      %40 = vector.broadcast %cst_13 : f32 to vector<8x128xf32>
      %41 = arith.addf %39, %40 : vector<8x128xf32>
      %42 = arith.mulf %41, %31 : vector<8x128xf32>
      %cst_14 = arith.constant 0.185208321 : f32
      %43 = vector.broadcast %cst_14 : f32 to vector<8x128xf32>
      %44 = arith.addf %42, %43 : vector<8x128xf32>
      %45 = arith.mulf %44, %31 : vector<8x128xf32>
      %cst_15 = arith.constant 1.12837911 : f32
      %46 = vector.broadcast %cst_15 : f32 to vector<8x128xf32>
      %47 = arith.addf %45, %46 : vector<8x128xf32>
      %cst_16 = arith.constant 0.000000e+00 : f32
      %48 = vector.broadcast %cst_16 : f32 to vector<8x128xf32>
      %49 = arith.mulf %48, %31 : vector<8x128xf32>
      %cst_17 = arith.constant -1.17916031E-7 : f32
      %50 = vector.broadcast %cst_17 : f32 to vector<8x128xf32>
      %51 = arith.addf %49, %50 : vector<8x128xf32>
      %52 = arith.mulf %51, %31 : vector<8x128xf32>
      %cst_18 = arith.constant 2.35479656E-5 : f32
      %53 = vector.broadcast %cst_18 : f32 to vector<8x128xf32>
      %54 = arith.addf %52, %53 : vector<8x128xf32>
      %55 = arith.mulf %54, %31 : vector<8x128xf32>
      %cst_19 = arith.constant 0.00101796258 : f32
      %56 = vector.broadcast %cst_19 : f32 to vector<8x128xf32>
      %57 = arith.addf %55, %56 : vector<8x128xf32>
      %58 = arith.mulf %57, %31 : vector<8x128xf32>
      %cst_20 = arith.constant 0.0140704699 : f32
      %59 = vector.broadcast %cst_20 : f32 to vector<8x128xf32>
      %60 = arith.addf %58, %59 : vector<8x128xf32>
      %61 = arith.mulf %60, %31 : vector<8x128xf32>
      %cst_21 = arith.constant 0.110985048 : f32
      %62 = vector.broadcast %cst_21 : f32 to vector<8x128xf32>
      %63 = arith.addf %61, %62 : vector<8x128xf32>
      %64 = arith.mulf %63, %31 : vector<8x128xf32>
      %cst_22 = arith.constant 0.497469246 : f32
      %65 = vector.broadcast %cst_22 : f32 to vector<8x128xf32>
      %66 = arith.addf %64, %65 : vector<8x128xf32>
      %67 = arith.mulf %66, %31 : vector<8x128xf32>
      %cst_23 = arith.constant 1.000000e+00 : f32
      %68 = vector.broadcast %cst_23 : f32 to vector<8x128xf32>
      %69 = arith.addf %67, %68 : vector<8x128xf32>
      %70 = arith.mulf %30, %47 : vector<8x128xf32>
      %71 = arith.divf %70, %69 : vector<8x128xf32>
      %cst_24 = arith.constant 1.000000e+00 : f32
      %72 = vector.broadcast %cst_24 : f32 to vector<8x128xf32>
      %73 = arith.addf %72, %71 : vector<8x128xf32>
      %74 = arith.mulf %24, %73 : vector<8x128xf32>
      %c0_25 = arith.constant 0 : index
      %c0_26 = arith.constant 0 : index
      %75 = vector.load %arg10[%c0_25, %c0_26] : memref<128x128xf32, #tpu.memory_space<vmem>>, vector<128x128xf32>
      %cst_27 = arith.constant dense<0.000000e+00> : vector<8x128xf32>
      %76 = tpu.matmul %74, %75, %cst_27 {dimension_numbers = #tpu.dot_dimension_numbers<[1], [0], [0], [1], [0, 0, 1, 1], [], []>} : vector<8x128xf32>, vector<128x128xf32>, vector<8x128xf32> -> vector<8x128xf32>
      %c0_28 = arith.constant 0 : index
      %c0_29 = arith.constant 0 : index
      %77 = vector.load %arg11[%c0_28, %c0_29] : memref<1x128xf32, #tpu.memory_space<vmem>>, vector<1x128xf32>
      %78 = vector.broadcast %77 : vector<1x128xf32> to vector<8x128xf32>
      %79 = arith.addf %76, %78 : vector<8x128xf32>
      %c0_30 = arith.constant 0 : index
      %c0_31 = arith.constant 0 : index
      %80 = vector.load %arg12[%c0_30, %c0_31] : memref<8x128xf32, #tpu.memory_space<vmem>>, vector<8x128xf32>
      tpu.vector_store %arg12[%c0_30, %c0_31], %79 {strides = array<i32>} : memref<8x128xf32, #tpu.memory_space<vmem>>, vector<8x128xf32>,
    } else {
    }
    return
  }
  func.func @transform_0(%arg0: i32, %arg1: i32, %arg2: i32, %arg3: memref<6xi32, #tpu.memory_space<smem>>, %arg4: memref<6xi32, #tpu.memory_space<smem>>) -> (i32, i32, i32) {
    %c2_i32 = arith.constant 2 : i32
    %0 = arith.muli %arg0, %c2_i32 : i32
    %1 = arith.addi %0, %arg1 : i32
    %2 = arith.index_cast %1 : i32 to index
    %3 = memref.load %arg4[%2] : memref<6xi32, #tpu.memory_space<smem>>
    %4 = arith.index_cast %1 : i32 to index
    %5 = memref.load %arg3[%4] : memref<6xi32, #tpu.memory_space<smem>>
    %c1_i32 = arith.constant 1 : i32
    %6 = arith.subi %3, %c1_i32 : i32
    %c0_i32 = arith.constant 0 : i32
    %7 = arith.maxsi %6, %c0_i32 : i32
    %8 = arith.minsi %arg2, %7 : i32
    %9 = arith.addi %5, %8 : i32
    %c0_i32_0 = arith.constant 0 : i32
    %c0_i32_1 = arith.constant 0 : i32
    return %arg1, %c0_i32_0, %9 : i32, i32, i32
  }
  func.func @transform_1(%arg0: i32, %arg1: i32, %arg2: i32, %arg3: memref<6xi32, #tpu.memory_space<smem>>, %arg4: memref<6xi32, #tpu.memory_space<smem>>) -> (i32, i32, i32) {
    %c2_i32 = arith.constant 2 : i32
    %0 = arith.muli %arg0, %c2_i32 : i32
    %1 = arith.addi %0, %arg1 : i32
    %2 = arith.index_cast %1 : i32 to index
    %3 = memref.load %arg4[%2] : memref<6xi32, #tpu.memory_space<smem>>
    %4 = arith.index_cast %1 : i32 to index
    %5 = memref.load %arg3[%4] : memref<6xi32, #tpu.memory_space<smem>>
    %c1_i32 = arith.constant 1 : i32
    %6 = arith.subi %3, %c1_i32 : i32
    %c0_i32 = arith.constant 0 : i32
    %7 = arith.maxsi %6, %c0_i32 : i32
    %8 = arith.minsi %arg2, %7 : i32
    %9 = arith.addi %5, %8 : i32
    %c0_i32_0 = arith.constant 0 : i32
    %c0_i32_1 = arith.constant 0 : i32
    return %arg1, %c0_i32_0, %9 : i32, i32, i32
  }
  func.func @transform_2(%arg0: i32, %arg1: i32, %arg2: i32, %arg3: memref<6xi32, #tpu.memory_space<smem>>, %arg4: memref<6xi32, #tpu.memory_space<smem>>) -> (i32, i32, i32) {
    %c2_i32 = arith.constant 2 : i32
    %0 = arith.muli %arg0, %c2_i32 : i32
    %1 = arith.addi %0, %arg1 : i32
    %2 = arith.index_cast %1 : i32 to index
    %3 = memref.load %arg4[%2] : memref<6xi32, #tpu.memory_space<smem>>
    %4 = arith.index_cast %1 : i32 to index
    %5 = memref.load %arg3[%4] : memref<6xi32, #tpu.memory_space<smem>>
    %c1_i32 = arith.constant 1 : i32
    %6 = arith.subi %3, %c1_i32 : i32
    %c0_i32 = arith.constant 0 : i32
    %7 = arith.maxsi %6, %c0_i32 : i32
    %8 = arith.minsi %arg2, %7 : i32
    %9 = arith.addi %5, %8 : i32
    %c0_i32_0 = arith.constant 0 : i32
    %c0_i32_1 = arith.constant 0 : i32
    return %arg1, %9, %c0_i32_0 : i32, i32, i32
  }
  func.func @transform_3(%arg0: i32, %arg1: i32, %arg2: i32, %arg3: memref<6xi32, #tpu.memory_space<smem>>, %arg4: memref<6xi32, #tpu.memory_space<smem>>) -> (i32, i32, i32) {
    %c2_i32 = arith.constant 2 : i32
    %0 = arith.muli %arg0, %c2_i32 : i32
    %1 = arith.addi %0, %arg1 : i32
    %2 = arith.index_cast %1 : i32 to index
    %3 = memref.load %arg4[%2] : memref<6xi32, #tpu.memory_space<smem>>
    %4 = arith.index_cast %1 : i32 to index
    %5 = memref.load %arg3[%4] : memref<6xi32, #tpu.memory_space<smem>>
    %c1_i32 = arith.constant 1 : i32
    %6 = arith.subi %3, %c1_i32 : i32
    %c0_i32 = arith.constant 0 : i32
    %7 = arith.maxsi %6, %c0_i32 : i32
    %8 = arith.minsi %arg2, %7 : i32
    %9 = arith.addi %5, %8 : i32
    %c0_i32_0 = arith.constant 0 : i32
    %c0_i32_1 = arith.constant 0 : i32
    return %arg1, %9, %c0_i32_0 : i32, i32, i32
  }
  func.func @transform_4(%arg0: i32, %arg1: i32, %arg2: i32, %arg3: memref<6xi32, #tpu.memory_space<smem>>, %arg4: memref<6xi32, #tpu.memory_space<smem>>) -> (i32, i32, i32) {
    %c0_i32 = arith.constant 0 : i32
    %c0_i32_0 = arith.constant 0 : i32
    %c0_i32_1 = arith.constant 0 : i32
    return %arg1, %c0_i32, %c0_i32_0 : i32, i32, i32
  }
  func.func @transform_5(%arg0: i32, %arg1: i32, %arg2: i32, %arg3: memref<6xi32, #tpu.memory_space<smem>>, %arg4: memref<6xi32, #tpu.memory_space<smem>>) -> (i32, i32) {
    %c0_i32 = arith.constant 0 : i32
    %c0_i32_0 = arith.constant 0 : i32
    %c0_i32_1 = arith.constant 0 : i32
    return %c0_i32, %c0_i32_0 : i32, i32
  }
  func.func @transform_6(%arg0: i32, %arg1: i32, %arg2: i32, %arg3: memref<6xi32, #tpu.memory_space<smem>>, %arg4: memref<6xi32, #tpu.memory_space<smem>>) -> (i32, i32) {
    %c0_i32 = arith.constant 0 : i32
    %c0_i32_0 = arith.constant 0 : i32
    %c0_i32_1 = arith.constant 0 : i32
    return %c0_i32, %c0_i32_0 : i32, i32
  }
  func.func @transform_7(%arg0: i32, %arg1: i32, %arg2: i32, %arg3: memref<6xi32, #tpu.memory_space<smem>>, %arg4: memref<6xi32, #tpu.memory_space<smem>>) -> (i32, i32) {
    %c0_i32 = arith.constant 0 : i32
    %c0_i32_0 = arith.constant 0 : i32
    return %arg0, %c0_i32 : i32, i32
  }
}

</mosaic_0001>

<bundles_post_ra>
// kernel: tpu_custom_call.1
= control target key start
LH: loop header
LB: loop body
LE: loop exit
PB: predicated region body
PF: predicated region fallthrough
CT: control target
= control target key end

     0   :  { %s3712_s0 = inlined_call_operand.hbm [shape: s32[6], index: 0, kind: input, shape index: {}]   ;;  %s3713_s2 = inlined_call_operand.vmem [shape: s32[2,1,384], index: 2, kind: input, shape index: {}]   ;;  %s3714_s3 = inlined_call_operand.hbm [shape: f32[2,1,384], index: 3, kind: input, shape index: {}]   ;;  %s3715_s4 = inlined_call_operand.hbm [shape: f32[2,384,128], index: 4, kind: input, shape index: {}]   ;;  %s3716_s5 = inlined_call_operand.hbm [shape: f32[2,384,128], index: 5, kind: input, shape index: {}]   ;;  %s3717_s6 = inlined_call_operand.hbm [shape: f32[2,128,128], index: 6, kind: input, shape index: {}]   ;;  %s3718_s7 = inlined_call_operand.hbm [shape: f32[128,128], index: 7, kind: input, shape index: {}]   ;;  %s3719_s8 = inlined_call_operand.vmem [shape: f32[1,128], index: 8, kind: input, shape index: {}]   ;;  %s3720_s9 = inlined_call_operand.hbm [shape: f32[24,128], index: 9, kind: output, shape index: {}]   ;;  %s3721_s1 = inlined_call_operand.vmem [shape: s32[6], index: 1, kind: input, shape index: {}]  }
   0x1   :  { %3769 = sst [smem:[#allocation61_spill]] %s3713_s2  ;;  %s2298_s11 = scalar_lea.hbm %s3712_s0, 16 }
   0x2   :  { %3770 = sst [smem:[#allocation62_spill]] %s3714_s3  ;;  %p2299_p0 = scmp.ne.s32.totalorder %s3712_s0, %s2298_s11 }
   0x3   :  { %3771 = sst [smem:[#allocation63_spill]] %s3715_s4  ;;  %p2302_p1 = scmp.lt.u32.totalorder %s2298_s11, %s3712_s0 }
   0x4   :  { %3772 = sst [smem:[#allocation64_spill]] %s3716_s5 }
   0x5   :  { %3773 = sst [smem:[#allocation65_spill]] %s3717_s6  ;;  %p2304_p2 = pnand %p2302_p1, %p2299_p0 }
   0x6   :  { %3774 = sst [smem:[#allocation66_spill]] %s3718_s7 }
   0x7   :  { %3775 = sst [smem:[#allocation67_spill]] %s3719_s8 }
   0x8   :  { %3776 = sst [smem:[#allocation68_spill]] %s3720_s9 }
   0x9   :  { %2307 = shalt.err (!%p2304_p2)  }
   0xa   :  { %s2698_s16 = smov [#allocation3]   ;;  %s16_s21 = sshll.u32 %s3721_s1, 4  ;;  %s17_s21 = int_to_ptr.vmem [resolvable:$true] %s16_s21 }
   0xb   :  { %15 = dma.hbm_to_smem %s3712_s0, 16, %s2698_s16, [#allocation2] }
   0xc   :  { %s2308_s22 = scalar_lea.vmem %s17_s21, 16  ;;  %p2313_p4 = scmp.lt.s32.totalorder %s17_s21, %s17_s21 }
   0xd   :  { %p2309_p3 = scmp.ne.s32.totalorder %s17_s21, %s2308_s22  ;;  %p2314_p5 = scmp.lt.s32.totalorder %s2308_s22, %s2308_s22 }
   0xf   :  { %p2315_p6 = por %p2314_p5, %p2313_p4 }
  0x11   :  { %p2316_p7 = pnand %p2315_p6, %p2309_p3 }
  0x13   :  { %2319 = shalt.err (!%p2316_p7)  }
  0x14   :  { %s2699_s23 = smov [#allocation4]  }
  0x15   :  { %19 = dma.vmem_to_smem %s17_s21, 16, %s2699_s23, [#allocation2] }
  0x16   :  { %2584 = dma.done.wait [#allocation2], 32 }
  0x17   :  { %2585 = vsyncadd [#allocation2], 4294967264 }
  0x18   :  { %21 = sfence }
  0x19   :  { %22 = vsyncpa [#allocation6], 0 }
  0x1a   :  { %24 = vsyncpa [#allocation6 + $0x1], 0 }
  0x1b   :  { %25 = vsyncpa [#allocation9], 0 }
  0x1c   :  { %27 = vsyncpa [#allocation9 + $0x1], 0 }
  0x1d   :  { %28 = vsyncpa [#allocation12], 0 }
  0x1e   :  { %30 = vsyncpa [#allocation12 + $0x1], 0 }
  0x1f   :  { %31 = vsyncpa [#allocation7], 0 }
  0x20   :  { %33 = vsyncpa [#allocation7 + $0x1], 0  ;;  %s2782_s0 = smov 0   ;;  %s2784_s1 = smov 0  }
  0x21   :  { %s2786_s24 = smov 0   ;;  %s2788_s25 = smov 0  }
  0x22   :  { %s2790_s26 = smov 0   ;;  %s2792_s27 = smov 0  }
  0x23   :  { %s2794_s28 = smov 0   ;;  %s2796_s29 = smov 0  }
  0x24   :  { %s2798_s30 = smov 0   ;;  %s2800_s10 = smov 0  }
  0x25   :  { %s2802_s11 = smov 0   ;;  %s2804_s12 = smov 0  }
  0x26   :  { %s2806_s13 = smov 0   ;;  %s2808_s14 = smov 0  }
  0x27   :  { %s2810_s15 = smov 0   ;;  %s2812_s16 = smov 0  }
  0x28   :  { %s2814_s17 = smov 0   ;;  %s2816_s18 = smov 0  }
  0x29   :  { %s2818_s19 = smov 0   ;;  %s2820_s20 = smov 0  }
  0x2a   :  { %s2822_s21 = smov 0   ;;  %s2824_s22 = smov 0  }
  0x2b LB: > { %3777 = sst [smem:[#allocation34_spill]] %s2612_s0  ;;  %s2893_s23 = sadd.s32 4294967295, %s2696_s22   ;;  %s2696_s22 = sphi %s2824_s22, %s39_s22   ;;  %s2692_s21 = sphi %s2822_s21, %s3939_s21   ;;  %s2688_s20 = sphi %s2820_s20, %s3938_s20   ;;  %s2684_s19 = sphi %s2818_s19, %s3937_s19   ;;  %s2680_s18 = sphi %s2816_s18, %s3936_s18   ;;  %s2676_s17 = sphi %s2814_s17, %s3935_s17   ;;  %s2672_s16 = sphi %s2812_s16, %s3934_s16   ;;  %s2668_s15 = sphi %s2810_s15, %s3933_s15   ;;  %s2664_s14 = sphi %s2808_s14, %s3932_s14   ;;  %s2660_s13 = sphi %s2806_s13, %s3918_s13   ;;  %s2656_s12 = sphi %s2804_s12, %s3917_s12   ;;  %s2652_s11 = sphi %s2802_s11, %s3916_s11   ;;  %s2648_s10 = sphi %s2800_s10, %s3915_s10   ;;  %s2644_s30 = sphi %s2798_s30, %s3931_s30   ;;  %s2640_s29 = sphi %s2796_s29, %s3930_s29   ;;  %s2636_s28 = sphi %s2794_s28, %s3928_s28   ;;  %s2632_s27 = sphi %s2792_s27, %s3927_s27   ;;  %s2628_s26 = sphi %s2790_s26, %s3912_s26   ;;  %s2624_s25 = sphi %s2788_s25, %s3924_s25   ;;  %s2620_s24 = sphi %s2786_s24, %s3922_s24   ;;  %s2616_s1 = sphi %s2784_s1, %s3920_s1   ;;  %s2612_s0 = sphi %s2782_s0, %s3908_s0  }
  0x2c   : > { %3778 = sst [smem:[#allocation35_spill]] %s2616_s1  ;;  %s1608_s9 = sadd.s32 4294967294, %s2696_s22  }
  0x2d   : > { %3779 = sst [smem:[#allocation36_spill]] %s2620_s24  ;;  %p3734_p8 = scmp.eq.s32.totalorder %s2893_s23, 0 }
  0x2e   : > { %3780 = sst [smem:[#allocation37_spill]] %s2624_s25  ;;  %p335_p9 = scmp.ne.s32.totalorder %s2620_s24, %s2616_s1 }
  0x2f   : > { %3781 = sst [smem:[#allocation38_spill]] %s2628_s26  ;;  %p336_p10 = scmp.eq.s32.totalorder %s2893_s23, 11 }
  0x30   : > { %3782 = sst [smem:[#allocation39_spill]] %s2632_s27  ;;  %p341_p11 = scmp.ne.s32.totalorder %s2616_s1, %s2612_s0 }
  0x31   : > { %3783 = sst [smem:[#allocation40_spill]] %s2636_s28  ;;  %p342_p12 = scmp.eq.s32.totalorder %s1608_s9, 11 }
  0x32   : > { %3784 = sst [smem:[#allocation41_spill]] %s2652_s11  ;;  %p2902_p13 = por %p336_p10, %p335_p9 }
  0x33   : > { %3785 = sst [smem:[#allocation42_spill]] %s2656_s12  ;;  %p1625_p0 = scmp.ge.s32.totalorder %s2696_s22, 1 }
  0x34   : > { %3786 = sst [smem:[#allocation43_spill]] %s2664_s14  ;;  %p2907_p1 = por %p342_p12, %p341_p11 }
  0x35   : > { %3787 = sst [smem:[#allocation44_spill]] %s2672_s16  ;;  %p349_p2 = scmp.lt.s32.totalorder %s2696_s22, 13 }
  0x36   : > { %3788 = sst [smem:[#allocation45_spill]] %s2676_s17  ;;  %s2700_s17 = smov [#allocation13]  }
  0x37   : > { %3789 = sst [smem:[#allocation46_spill]] %s2680_s18  ;;  %p2912_p3 = pnand %p1625_p0, %p349_p2 }
  0x38   : > { %3790 = sst [smem:[#allocation47_spill]] %s2692_s21  ;;  %s361_s18 = sshll.u32 %s2700_s17, 4  ;;  %s362_s18 = int_to_ptr.vmem [resolvable:$true] %s361_s18 }
  0x39   : > { %3791 = sst [smem:[#allocation48_spill]] %s2893_s23  ;;  %p1982_p4 = pneg %p2912_p3 }
  0x3a   : > { %s3792_s8 = scalar_select %p2902_p13, 1, 0 }
  0x3b   : > { %s3794_s2 = scalar_select %p2907_p1, 1, 0 }
  0x3c   : > { %3793 = sst [smem:[#allocation49_spill]] %s3792_s8  ;;  %p2921_p5 = pnand %p1982_p4, %p3734_p8 }
  0x3d   : > { %3795 = sst [smem:[#allocation50_spill]] %s3794_s2 }
  0x3e   : > { %s3796_s16 = scalar_select %p2912_p3, 1, 0 }
  0x3f   : > { %s3799_s7 = sld [smem:[#allocation66_spill]]  ;;  %p2322_p9 = pneg %p2921_p5 }
  0x40   : > { %3797 = sst [smem:[#allocation51_spill]] %s3796_s16 }
  0x45   : > { %s2320_s8 = scalar_lea.hbm %s3799_s7, 2048 }
  0x46   : > { %p2321_p7 = scmp.ne.s32.totalorder %s3799_s7, %s2320_s8  ;;  %p2327_p12 = scmp.lt.u32.totalorder %s2320_s8, %s3799_s7 }
  0x48   : > { %p2323_p10 = pnand %p2322_p9, %p2321_p7 }
  0x4a   : > { %p2324_p11 = pneg %p2323_p10 }
  0x4c   : > { %p2329_p0 = pnand %p2327_p12, %p2324_p11 }
  0x4e   : > { %2332 = shalt.err (!%p2329_p0)
}
  0x4f   : > { %s2333_s16 = scalar_lea.vmem %s362_s18, 2048  ;;  %p2341_p8 = scmp.lt.s32.totalorder %s362_s18, %s362_s18 }
  0x50   : > { %p2334_p2 = scmp.ne.s32.totalorder %s362_s18, %s2333_s16  ;;  %p2342_p1 = scmp.lt.s32.totalorder %s2333_s16, %s2333_s16 }
  0x52   : > { %p2336_p4 = pnand %p2334_p2, %p2322_p9  ;;  %p2343_p13 = por %p2342_p1, %p2341_p8 }
  0x54   : > { %p2337_p6 = pneg %p2336_p4 }
  0x56   : > { %p2344_p3 = pnand %p2343_p13, %p2337_p6 }
  0x58   : > { %2347 = shalt.err (!%p2344_p3)
}
  0x59   : > { %s3737_s2 = smov 128   ;;  %s3739_s5 = smov 8  }
  0x5a   : > { %1985 = dma.hbm_to_vmem [thread:$0]  (!%p2921_p5), %s3799_s7, 2048, %s362_s18, [#allocation12], %s3737_s2, %s3737_s2, %s3739_s5  }
  0x5b   : > { %s51_s0 = sadd.s32 1, %s2684_s19  ;;  %s54_s1 = sadd.s32 1, %s2688_s20 }
  0x5c   : > { %p52_p8 = scmp.ge.s32.totalorder %s51_s0, 2  ;;  %s58_s16 = sadd.s32 1, %s2692_s21 }
  0x5d   : > { %s1613_s17 = sshll.u32 %s2692_s21, 1  ;;  %p3753_p13 = scmp.eq.s32.totalorder %s2696_s22, 0 }
  0x5e   : > { %s3941_s0 = smov (%p52_p8, %s51_s0), 0  ;;  %s3943_s1 = smov (!%p52_p8, %s54_s1), %s2688_s20 }
  0x5f   : > { %s3800_s25 = smov %s3941_s0  ;;  %s2953_s9 = sadd.s32 %s2688_s20, %s1613_s17 }
  0x60   : > { %3801 = sst [smem:[#allocation52_spill]] %s2953_s9  ;;  %p56_p1 = scmp.ge.s32.totalorder %s3943_s1, 2 }
  0x61   : > { %s160_s18 = sld [smem:[#allocation4 + %s2953_s9]]  ;;  %p190_p3 = scmp.ne.s32.totalorder %s2656_s12, %s2652_s11 }
  0x62   : > { %s3945_s1 = smov (%p56_p1, %s3943_s1), 0  ;;  %s3947_s16 = smov (!%p56_p1, %s58_s16), %s2692_s21 }
  0x63   : > { %3802 = sst [smem:[#allocation53_spill]] %s3945_s1  ;;  %s3803_s8 = smov %s3945_s1 }
  0x64   : > { %s2965_s2 = ssub.s32 %s2688_s20, %s3803_s8  ;;  %s2968_s0 = sld [smem:[#allocation3 + %s2953_s9]] }
  0x65   : > { %p60_p5 = scmp.ge.s32.totalorder %s3947_s16, 3  ;;  %p196_p6 = scmp.ne.s32.totalorder %s2652_s11, %s2648_s10 }
  0x66   : > { %p2974_p7 = por %p190_p3, %p3753_p13  ;;  %p3806_p10 = scmp.eq.s32.totalorder %s2893_s23, 0 }
  0x67   : > { %s1618_s17 = sadd.s32 4294967295, %s160_s18  ;;  %s3949_s16 = smov (%p60_p5, %s3947_s16), 0 }
  0x68   : > { %3805 = sst [smem:[#allocation54_spill]] %s3949_s16  ;;  %p163_p9 = scmp.gt.s32.totalorder %s1618_s17, 0 }
  0x69   : > { %p2982_p11 = por %p196_p6, %p3806_p10  ;;  %s1615_s10 = sshll.u32 %s3949_s16, 1 }
  0x6a   : > { %s322_s18 = ssub.s32 %s2692_s21, %s3949_s16  ;;  %s2990_s6 = sadd.s32 %s1615_s10, %s3803_s8 }
  0x6b   : > { %s3807_s1 = scalar_select %p2982_p11, 1, 0 }
  0x6c   : > { %p323_p12 = scmp.eq.s32.totalorder %s322_s18, 0  ;;  %s3951_s17 = smov (!%p163_p9, %s1618_s17), 0 }
  0x6d   : > { %3808 = sst [smem:[#allocation55_spill]] %s3807_s1  ;;  %p165_p0 = scmp.lt.s32.totalorder %s2684_s19, %s3951_s17 }
  0x6e   : > { %s170_s7 = sld [smem:[#allocation4 + %s2990_s6]]  ;;  %s3809_s27 = sadd.s32 1, %s2620_s24 }
  0x6f   : > { %s171_s26 = sld [smem:[#allocation3 + %s2990_s6]]  ;;  %s439_s10 = sand.u32 1, %s2656_s12  }
  0x70   : > { %s2999_s1 = scalar_select %p323_p12, %s2620_s24, %s3809_s27  }
  0x71   : > { %s166_s16 = scalar_select %p165_p0, %s2684_s19, %s3951_s17 }
  0x72   : > { %3810 = sst [smem:[#allocation56_spill]] %s2999_s1  ;;  %s1631_s8 = sshll.u32 %s439_s10, 7 }
  0x73   : > { %s167_s21 = sadd.s32 %s166_s16, %s2968_s0  ;;  %s441_s17 = scalar_lea.vmem [#allocation8], %s1631_s8 }
  0x74   : > { %s1620_s3 = sadd.s32 4294967295, %s170_s7  ;;  %s460_s1 = sshll.u32 %s441_s17, 4  ;;  %s3025_s1 = int_to_ptr.vmem [resolvable:$true] %s460_s1 }
  0x75   : > { %p173_p2 = scmp.gt.s32.totalorder %s1620_s3, 0  ;;  %p3811_p8 = scmp.lt.s32.totalorder %s2696_s22, 12 }
  0x76   : > { %s1963_s11 = scalar_select %p2974_p7, [#allocation4], [#allocation17] }
  0x77   : > { %s3953_s3 = smov (!%p173_p2, %s1620_s3), 0  ;;  %p3812_p1 = pmov %p3811_p8 }
  0x78   : > { %s1964_s27 = scalar_select %p2974_p7, %s2953_s9, 0 }
  0x79   : > { %p175_p4 = scmp.lt.s32.totalorder %s3800_s25, %s3953_s3  ;;  %s3955_s11 = smov (!%p3811_p8, %s1963_s11), [#allocation23] }
  0x7a   : > { %s3957_s27 = smov (!%p3812_p1, %s1964_s27), 0  ;;  %p3813_p3 = pmov %p3812_p1 }
  0x7b   : > { %s176_s10 = scalar_select %p175_p4, %s3800_s25, %s3953_s3 }
  0x7c   : > { %p3020_p5 = pnand %p3813_p3, %p2974_p7  ;;  %s444_s8 = sld [smem:[%s3955_s11 + %s3957_s27]] }
  0x7d   : > { %s177_s7 = sadd.s32 %s176_s10, %s171_s26  ;;  %s3815_s26 = sadd.s32 1, %s2656_s12 }
  0x7e   : > { %s179_s0 = ssub.s32 %s167_s21, %s177_s7  ;;  %p3817_p9 = pmov %p3812_p1 }
  0x7f   : > { %s180_s17 = sor.u32 %s179_s0, %s2965_s2  ;;  %s3038_s11 = sld [smem:[#allocation4 + %s2953_s9]] }
  0x80   : > { %p181_p6 = scmp.eq.s32.totalorder %s180_s17, 0  ;;  %s3042_s0 = sld [smem:[#allocation3 + %s2953_s9]] }
  0x81   : > { %s1965_s3 = scalar_select %p2974_p7, [#allocation3], [#allocation18] }
  0x82   : > { %s3032_s10 = scalar_select %p181_p6, %s2656_s12, %s3815_s26  }
  0x83   : > { %s3959_s3 = smov (!%p3817_p9, %s1965_s3), [#allocation24]  ;;  %s1633_s21 = sadd.s32 4294967295, %s444_s8 }
  0x84   : > { %3816 = sst [smem:[#allocation57_spill]] %s3032_s10  ;;  %p447_p10 = scmp.gt.s32.totalorder %s1633_s21, 0 }
  0x85   : > { %s445_s7 = sld [smem:[%s3959_s3 + %s3957_s27]]  ;;  %s3818_s27 = smul.u32 48, %s2688_s20 }
  0x86   : > { %s3961_s21 = smov (!%p447_p10, %s1633_s21), 0  ;;  %s3045_s17 = sld [smem:[#allocation4 + %s2990_s6]] }
  0x87   : > { %p449_p12 = scmp.lt.s32.totalorder %s2684_s19, %s3961_s21  ;;  %s3048_s18 = sld [smem:[#allocation3 + %s2990_s6]] }
  0x88   : > { %s1614_s12 = sadd.s32 4294967295, %s3038_s11  ;;  %s3819_s4 = sld [smem:[#allocation63_spill]] }
  0x89   : > { %s450_s5 = scalar_select %p449_p12, %s2684_s19, %s3961_s21 }
  0x8a   : > { %p3064_p2 = scmp.gt.s32.totalorder %s1614_s12, 0  ;;  %p2350_p8 = pneg %p3020_p5 }
  0x8b   : > { %s451_s26 = sadd.s32 %s450_s5, %s445_s7  ;;  %s3821_s5 = sand.u32 1, %s2696_s22  }
  0x8c   : > { %s1634_s8 = sshll.u32 %s451_s26, 4  ;;  %s3070_s26 = scalar_lea.sflag [#allocation9], %s3821_s5 }
  0x8d   : > { %s457_s3 = sadd.s32 %s3818_s27, %s1634_s8  ;;  %3822 = sst [smem:[#allocation58_spill]] %s3070_s26 }
  0x8e   : > { %s1635_s10 = sshll.u32 %s457_s3, 7 }
  0x8f   : > { %s3060_s21 = scalar_lea.hbm %s3819_s4, %s1635_s10  ;;  %s2353_s10 = scalar_lea.hbm %s3819_s4, 12288 }
  0x90   : > { %s2348_s8 = scalar_lea.hbm %s3060_s21, 2048  ;;  %p2354_p6 = scmp.lt.u32.totalorder %s3060_s21, %s3819_s4 }
  0x91   : > { %p2349_p4 = scmp.ne.s32.totalorder %s3060_s21, %s2348_s8  ;;  %p2355_p9 = scmp.lt.u32.totalorder %s2353_s10, %s2348_s8 }
  0x92   : > { %p2357_p12 = scmp.lt.u32.totalorder %s2348_s8, %s3060_s21 }
  0x93   : > { %p2351_p1 = pnand %p2350_p8, %p2349_p4  ;;  %p2356_p10 = por %p2355_p9, %p2354_p6 }
  0x95   : > { %p2352_p3 = pneg %p2351_p1  ;;  %p2358_p0 = por %p2357_p12, %p2356_p10 }
  0x97   : > { %p2359_p13 = pnand %p2358_p0, %p2352_p3 }
  0x99   : > { %2362 = shalt.err (!%p2359_p13)
}
  0x9a   : > { %s2363_s5 = scalar_lea.vmem %s3025_s1, 2048  ;;  %s2703_s24 = smov [#allocation8]  }
  0x9b   : > { %p2364_p4 = scmp.ne.s32.totalorder %s3025_s1, %s2363_s5  ;;  %s2368_s28 = sshll.u32 %s2703_s24, 4  ;;  %s2369_s28 = int_to_ptr.vmem [resolvable:$false] %s2368_s28 }
  0x9c   : > { %s2370_s27 = scalar_lea.vmem %s2369_s28, 4096  ;;  %p2371_p11 = scmp.lt.s32.totalorder %s3025_s1, %s2369_s28 }
  0x9d   : > { %p2366_p1 = pnand %p2364_p4, %p2350_p8  ;;  %p2372_p6 = scmp.lt.s32.totalorder %s2370_s27, %s2363_s5 }
  0x9f   : > { %p2367_p7 = pneg %p2366_p1  ;;  %p2373_p9 = por %p2372_p6, %p2371_p11 }
  0xa1   : > { %p2374_p10 = pnand %p2373_p9, %p2367_p7 }
  0xa3   : > { %2377 = shalt.err (!%p2374_p10)
}
  0xa4   : > { %s3823_s8 = smov 8   ;;  %s3824_s10 = smov 128  }
  0xa5   : > { %2000 = dma.hbm_to_vmem [thread:$0]  (!%p3020_p5), %s3060_s21, 2048, %s3025_s1, %s3070_s26, %s3824_s10, %s3824_s10, %s3823_s8  }
  0xa6   : > { %s3963_s12 = smov (!%p3064_p2, %s1614_s12), 0  ;;  %s1616_s16 = sadd.s32 4294967295, %s3045_s17 }
  0xa7   : > { %p3825_p13 = scmp.ne.s32.totalorder %s2668_s15, %s2664_s14  ;;  %p3826_p11 = scmp.eq.s32.totalorder %s2696_s22, 0 }
  0xa8   : > { %p117_p0 = scmp.lt.s32.totalorder %s2684_s19, %s3963_s12  ;;  %p125_p8 = scmp.gt.s32.totalorder %s1616_s16, 0 }
  0xa9   : > { %p3111_p7 = por %p3826_p11, %p3825_p13  ;;  %p3828_p3 = scmp.ne.s32.totalorder %s2664_s14, %s2660_s13 }
  0xaa   : > { %p3829_p5 = scmp.eq.s32.totalorder %s2893_s23, 0  ;;  %s3965_s16 = smov (!%p125_p8, %s1616_s16), 0 }
  0xab   : > { %s118_s17 = scalar_select %p117_p0, %s2684_s19, %s3963_s12 }
  0xac   : > { %p3121_p12 = por %p3829_p5, %p3828_p3  ;;  %s135_s7 = sadd.s32 1, %s2668_s15 }
  0xad   : > { %s119_s21 = sadd.s32 %s118_s17, %s3042_s0  ;;  %p127_p2 = scmp.lt.s32.totalorder %s3800_s25, %s3965_s16 }
  0xae   : > { %s3830_s1 = scalar_select %p3121_p12, 1, 0 }
  0xaf   : > { %s1958_s5 = scalar_select %p3111_p7, [#allocation4], [#allocation15] }
  0xb0   : > { %3831 = sst [smem:[#allocation59_spill]] %s3830_s1  ;;  %s1952_s11 = smul.u32 3, %s2688_s20 }
  0xb1   : > { %s128_s13 = scalar_select %p127_p2, %s3800_s25, %s3965_s16 }
  0xb2   : > { %s1959_s24 = scalar_select %p3111_p7, %s2953_s9, 0 }
  0xb3   : > { %s129_s28 = sadd.s32 %s128_s13, %s3048_s18  ;;  %s3832_s12 = sand.u32 1, %s2668_s15  }
  0xb4   : > { %s131_s27 = ssub.s32 %s119_s21, %s129_s28  ;;  %s411_s1 = scalar_lea.vmem [#allocation5], %s3832_s12 }
  0xb5   : > { %s132_s4 = sor.u32 %s131_s27, %s2965_s2  ;;  %s430_s0 = sshll.u32 %s411_s1, 4  ;;  %s3160_s0 = int_to_ptr.vmem [resolvable:$true] %s430_s0 }
  0xb6   : > { %p133_p4 = scmp.eq.s32.totalorder %s132_s4, 0  ;;  %p3833_p1 = scmp.lt.s32.totalorder %s2696_s22, 12 }
  0xb7   : > { %s3836_s18 = sld [smem:[#allocation40_spill]]  ;;  %p3840_p5 = scmp.eq.s32.totalorder %s2696_s22, 0 }
  0xb8   : > { %p3145_p6 = pnand %p3833_p1, %p3111_p7  ;;  %p3835_p9 = pmov %p3833_p1 }
  0xb9   : > { %s3152_s16 = scalar_select %p133_p4, %s2668_s15, %s135_s7  }
  0xba   : > { %s3967_s5 = smov (!%p3835_p9, %s1958_s5), [#allocation21]  ;;  %p3838_p10 = pmov %p3833_p1 }
  0xbb   : > { %3837 = sst [smem:[#allocation60_spill]] %s3152_s16  ;;  %p3839_p13 = pmov %p3833_p1 }
  0xbc   : > { %s3969_s24 = smov (!%p3838_p10, %s1959_s24), 0  ;;  %s208_s13 = sld [smem:[#allocation4 + %s2953_s9]] }
  0xbd   : > { %s1960_s1 = scalar_select %p3111_p7, [#allocation3], [#allocation16] }
  0xbe   : > { %s414_s4 = sld [smem:[%s3967_s5 + %s3969_s24]]  ;;  %p238_p7 = scmp.ne.s32.totalorder %s2644_s30, %s2640_s29 }
  0xbf   : > { %s3971_s1 = smov (!%p3839_p13, %s1960_s1), [#allocation22]  ;;  %s3164_s7 = sld [smem:[#allocation4 + %s2990_s6]] }
  0xc0   : > { %s415_s21 = sld [smem:[%s3971_s1 + %s3969_s24]]  ;;  %p244_p0 = scmp.ne.s32.totalorder %s2640_s29, %s3836_s18 }
  0xc1   : > { %s3167_s27 = sld [smem:[#allocation3 + %s2953_s9]]  ;;  %p3179_p2 = por %p238_p7, %p3840_p5 }
  0xc2   : > { %s3170_s3 = sld [smem:[#allocation3 + %s2990_s6]]  ;;  %s1622_s5 = sadd.s32 4294967295, %s208_s13 }
  0xc3   : > { %p211_p3 = scmp.gt.s32.totalorder %s1622_s5, 0  ;;  %s3843_s10 = sld [smem:[#allocation62_spill]] }
  0xc4   : > { %s1629_s28 = sadd.s32 4294967295, %s414_s4  ;;  %p3845_p9 = scmp.eq.s32.totalorder %s2893_s23, 0 }
  0xc5   : > { %p417_p11 = scmp.gt.s32.totalorder %s1629_s28, 0  ;;  %s3975_s5 = smov (!%p211_p3, %s1622_s5), 0 }
  0xc6   : > { %s3841_s24 = scalar_select %p3179_p2, 1, 0 }
  0xc7   : > { %s3973_s28 = smov (!%p417_p11, %s1629_s28), 0  ;;  %s1624_s1 = sadd.s32 4294967295, %s3164_s7 }
  0xc8   : > { %p419_p8 = scmp.lt.s32.totalorder %s2684_s19, %s3973_s28  ;;  %p3193_p1 = scmp.gt.s32.totalorder %s1624_s1, 0 }
  0xc9   : > { %s3844_s8 = smov %s3843_s10  ;;  %p3207_p10 = por %p244_p0, %p3845_p9 }
  0xca   : > { %s420_s12 = scalar_select %p419_p8, %s2684_s19, %s3973_s28 }
  0xcb   : > { %p2380_p11 = pneg %p3145_p6 }
  0xcc   : > { %s421_s6 = sadd.s32 %s420_s12, %s415_s21  ;;  %s3847_s21 = sand.u32 1, %s2668_s15  }
  0xcd   : > { %s426_s4 = sadd.s32 %s1952_s11, %s421_s6  ;;  %s409_s28 = scalar_lea.sflag [#allocation6], %s3847_s21 }
  0xce   : > { %s1630_s16 = sshll.u32 %s426_s4, 4 }
  0xcf   : > { %s3200_s9 = scalar_lea.hbm %s3843_s10, %s1630_s16  ;;  %s2383_s10 = scalar_lea.hbm %s3844_s8, 96 }
  0xd0   : > { %s3846_s11 = scalar_select %p3207_p10, 1, 0 }
  0xd1   : > { %s2378_s12 = scalar_lea.hbm %s3200_s9, 16  ;;  %p2384_p0 = scmp.lt.u32.totalorder %s3200_s9, %s3844_s8 }
  0xd2   : > { %p2379_p13 = scmp.ne.s32.totalorder %s3200_s9, %s2378_s12  ;;  %p2385_p3 = scmp.lt.u32.totalorder %s2383_s10, %s2378_s12 }
  0xd3   : > { %p2387_p9 = scmp.lt.u32.totalorder %s2378_s12, %s3200_s9 }
  0xd4   : > { %p2381_p7 = pnand %p2380_p11, %p2379_p13  ;;  %p2386_p5 = por %p2385_p3, %p2384_p0 }
  0xd6   : > { %p2382_p8 = pneg %p2381_p7  ;;  %p2388_p4 = por %p2387_p9, %p2386_p5 }
  0xd8   : > { %p2389_p10 = pnand %p2388_p4, %p2382_p8 }
  0xda   : > { %2392 = shalt.err (!%p2389_p10)
}
  0xdb   : > { %s2393_s6 = scalar_lea.vmem %s3160_s0, 16  ;;  %s2704_s4 = smov [#allocation5]  }
  0xdc   : > { %p2394_p13 = scmp.ne.s32.totalorder %s3160_s0, %s2393_s6  ;;  %s2398_s21 = sshll.u32 %s2704_s4, 4  ;;  %s2399_s21 = int_to_ptr.vmem [resolvable:$false] %s2398_s21 }
  0xdd   : > { %s2400_s14 = scalar_lea.vmem %s2399_s21, 32  ;;  %p2401_p2 = scmp.lt.s32.totalorder %s3160_s0, %s2399_s21 }
  0xde   : > { %p2396_p7 = pnand %p2394_p13, %p2380_p11  ;;  %p2402_p0 = scmp.lt.s32.totalorder %s2400_s14, %s2393_s6 }
  0xe0   : > { %p2397_p12 = pneg %p2396_p7  ;;  %p2403_p3 = por %p2402_p0, %p2401_p2 }
  0xe2   : > { %p2404_p5 = pnand %p2403_p3, %p2397_p12 }
  0xe4   : > { %2407 = shalt.err (!%p2404_p5)
}
  0xe5   : > { %1993 = dma.hbm_to_vmem [thread:$0]  (!%p3145_p6), %s3200_s9, 16, %s3160_s0, %s409_s28  }
  0xe6   : > { %p3848_p12 = scmp.lt.s32.totalorder %s2684_s19, %s3975_s5  ;;  %s3849_s12 = sld [smem:[#allocation52_spill]] }
  0xe7   : > { %s3977_s1 = smov (!%p3193_p1, %s1624_s1), 0  ;;  %s472_s10 = sand.u32 1, %s2644_s30  }
  0xe8   : > { %s214_s17 = scalar_select %p3848_p12, %s2684_s19, %s3975_s5 }
  0xe9   : > { %p223_p2 = scmp.lt.s32.totalorder %s3800_s25, %s3977_s1  ;;  %s1636_s18 = sshll.u32 %s472_s10, 7 }
  0xea   : > { %s215_s26 = sadd.s32 %s214_s17, %s3167_s27  ;;  %p3850_p4 = scmp.ne.s32.totalorder %s3841_s24, 0 }
  0xeb   : > { %p3851_p10 = scmp.lt.s32.totalorder %s2696_s22, 12  ;;  %s3853_s5 = sld [smem:[#allocation39_spill]] }
  0xec   : > { %s224_s9 = scalar_select %p223_p2, %s3800_s25, %s3977_s1 }
  0xed   : > { %p3254_p11 = pnand %p3851_p10, %p3850_p4  ;;  %s231_s27 = sadd.s32 1, %s2644_s30 }
  0xee   : > { %s1968_s0 = scalar_select %p3850_p4, [#allocation4], [#allocation19] }
  0xef   : > { %s225_s7 = sadd.s32 %s224_s9, %s3170_s3  ;;  %s3854_s13 = sld [smem:[#allocation38_spill]] }
  0xf0   : > { %s227_s28 = ssub.s32 %s215_s26, %s225_s7  ;;  %s474_s6 = scalar_lea.vmem [#allocation10], %s1636_s18 }
  0xf1   : > { %s3855_s4 = sld [smem:[#allocation37_spill]]  ;;  %s493_s21 = sshll.u32 %s474_s6, 4  ;;  %s3303_s21 = int_to_ptr.vmem [resolvable:$true] %s493_s21 }
  0xf2   : > { %s228_s14 = sor.u32 %s227_s28, %s2965_s2  ;;  %s3979_s12 = smov (!%p3850_p4, %s3849_s12), 0 }
  0xf3   : > { %p229_p6 = scmp.eq.s32.totalorder %s228_s14, 0  ;;  %p3856_p1 = pmov %p3851_p10 }
  0xf4   : > { %s1970_s3 = scalar_select %p3850_p4, [#allocation3], [#allocation20] }
  0xf5   : > { %s3268_s1 = scalar_select %p229_p6, %s2644_s30, %s231_s27  }
  0xf6   : > { %s3981_s0 = smov (!%p3856_p1, %s1968_s0), [#allocation25]  ;;  %p3857_p8 = pmov %p3856_p1 }
  0xf7   : > { %p3858_p9 = pmov %p3856_p1  ;;  %p255_p13 = scmp.eq.s32.totalorder %s2965_s2, 0 }
  0xf8   : > { %s3983_s12 = smov (!%p3857_p8, %s3979_s12), 0  ;;  %s257_s10 = sadd.s32 1, %s3853_s5 }
  0xf9   : > { %s477_s17 = sld [smem:[%s3981_s0 + %s3983_s12]]  ;;  %s3985_s3 = smov (!%p3858_p9, %s1970_s3), [#allocation26] }
  0xfa   : > { %s478_s26 = sld [smem:[%s3985_s3 + %s3983_s12]]  ;;  %p264_p7 = scmp.ne.s32.totalorder %s3853_s5, %s3854_s13 }
  0xfb   : > { %p270_p0 = scmp.ne.s32.totalorder %s3854_s13, %s3855_s4  ;;  %p3859_p5 = scmp.eq.s32.totalorder %s2696_s22, 0 }
  0xfc   : > { %s3291_s24 = scalar_select %p255_p13, %s3853_s5, %s257_s10  }
  0xfd   : > { %p3286_p12 = por %p264_p7, %p3859_p5  ;;  %p3861_p2 = scmp.eq.s32.totalorder %s2893_s23, 0 }
  0xfe   : > { %s505_s2 = sand.u32 1, %s3853_s5   ;;  %s1679_s7 = sshll.u32 %s2688_s20, 11 }
  0xff   : > { %s1638_s18 = sadd.s32 4294967295, %s477_s17  ;;  %p3295_p4 = por %p270_p0, %p3861_p2 }
 0x100   : > { %p480_p3 = scmp.gt.s32.totalorder %s1638_s18, 0  ;;  %s1641_s0 = sshll.u32 %s505_s2, 7 }
 0x101   : > { %s3862_s12 = scalar_select %p3295_p4, 1, 0 }
 0x102   : > { %s3987_s18 = smov (!%p480_p3, %s1638_s18), 0  ;;  %s507_s13 = scalar_lea.vmem [#allocation11], %s1641_s0 }
 0x103   : > { %p482_p10 = scmp.lt.s32.totalorder %s2684_s19, %s3987_s18  ;;  %s514_s28 = sshll.u32 %s507_s13, 4  ;;  %s3320_s28 = int_to_ptr.vmem [resolvable:$true] %s514_s28 }
 0x104   : > { %s3863_s3 = sld [smem:[#allocation65_spill]]  ;;  %p3864_p6 = pmov %p3856_p1 }
 0x105   : > { %s483_s27 = scalar_select %p482_p10, %s2684_s19, %s3987_s18 }
 0x106   : > { %p3314_p1 = pnand %p3864_p6, %p3286_p12  ;;  %s3866_s2 = smul.u32 48, %s2688_s20 }
 0x107   : > { %s484_s6 = sadd.s32 %s483_s27, %s478_s26  ;;  %s3867_s26 = sld [smem:[#allocation64_spill]] }
 0x108   : > { %s1639_s10 = sshll.u32 %s484_s6, 4  ;;  %p2410_p9 = pneg %p3254_p11 }
 0x109   : > { %s490_s8 = sadd.s32 %s3866_s2, %s1639_s10 }
 0x10a   : > { %s3308_s17 = scalar_lea.hbm %s3863_s3, %s1679_s7  ;;  %s1640_s18 = sshll.u32 %s490_s8, 7 }
 0x10d   : > { %s3868_s23 = smov %s3867_s26  ;;  %s3325_s27 = scalar_lea.hbm %s3867_s26, %s1640_s18 }
 0x10e   : > { %s2408_s9 = scalar_lea.hbm %s3325_s27, 2048  ;;  %s2413_s8 = scalar_lea.hbm %s3868_s23, 12288 }
 0x10f   : > { %p2409_p8 = scmp.ne.s32.totalorder %s3325_s27, %s2408_s9  ;;  %p2414_p0 = scmp.lt.u32.totalorder %s3325_s27, %s3868_s23 }
 0x110   : > { %p2415_p3 = scmp.lt.u32.totalorder %s2413_s8, %s2408_s9  ;;  %p2417_p12 = scmp.lt.u32.totalorder %s2408_s9, %s3325_s27 }
 0x111   : > { %p2411_p13 = pnand %p2410_p9, %p2409_p8 }
 0x112   : > { %p2416_p5 = por %p2415_p3, %p2414_p0 }
 0x113   : > { %p2412_p7 = pneg %p2411_p13 }
 0x114   : > { %p2418_p2 = por %p2417_p12, %p2416_p5 }
 0x116   : > { %p2419_p10 = pnand %p2418_p2, %p2412_p7 }
 0x118   : > { %2422 = shalt.err (!%p2419_p10)
}
 0x119   : > { %s2423_s10 = scalar_lea.vmem %s3303_s21, 2048  ;;  %s2705_s2 = smov [#allocation10]  }
 0x11a   : > { %p2424_p6 = scmp.ne.s32.totalorder %s3303_s21, %s2423_s10  ;;  %s2428_s18 = sshll.u32 %s2705_s2, 4  ;;  %s2429_s18 = int_to_ptr.vmem [resolvable:$false] %s2428_s18 }
 0x11b   : > { %s2430_s0 = scalar_lea.vmem %s2429_s18, 4096  ;;  %p2431_p4 = scmp.lt.s32.totalorder %s3303_s21, %s2429_s18 }
 0x11c   : > { %p2426_p8 = pnand %p2424_p6, %p2410_p9  ;;  %p2432_p0 = scmp.lt.s32.totalorder %s2430_s0, %s2423_s10 }
 0x11e   : > { %p2427_p13 = pneg %p2426_p8  ;;  %p2433_p3 = por %p2432_p0, %p2431_p4 }
 0x120   : > { %p2434_p5 = pnand %p2433_p3, %p2427_p13 }
 0x122   : > { %2437 = shalt.err (!%p2434_p5)
}
 0x123   : > { %s3869_s13 = smov 8   ;;  %s3870_s26 = smov 128  }
 0x124   : > { %s3871_s9 = sld [smem:[#allocation58_spill]]  ;;  %s3872_s7 = sand.u32 1, %s2696_s22  }
 0x125   : > { %s3358_s6 = scalar_lea.sflag [#allocation12], %s3872_s7  ;;  %s2438_s8 = scalar_lea.hbm %s3308_s17, 2048 }
 0x126   : > { %p2439_p4 = scmp.ne.s32.totalorder %s3308_s17, %s2438_s8  ;;  %p2440_p9 = pneg %p3314_p1 }
 0x127   : > { %s2443_s14 = scalar_lea.hbm %s3863_s3, 4096  ;;  %p2444_p2 = scmp.lt.u32.totalorder %s3308_s17, %s3863_s3 }
 0x128   : > { %p2441_p7 = pnand %p2440_p9, %p2439_p4  ;;  %p2447_p6 = scmp.lt.u32.totalorder %s2438_s8, %s3308_s17 }
 0x12a   : > { %2007 = dma.hbm_to_vmem [thread:$0]  (!%p3254_p11), %s3325_s27, 2048, %s3303_s21, %s3871_s9, %s3870_s26, %s3870_s26, %s3869_s13  }
 0x12b   : > { %p2442_p12 = pneg %p2441_p7  ;;  %p2445_p11 = scmp.lt.u32.totalorder %s2443_s14, %s2438_s8 }
 0x12d   : > { %p2446_p10 = por %p2445_p11, %p2444_p2 }
 0x12f   : > { %p2448_p8 = por %p2447_p6, %p2446_p10 }
 0x131   : > { %p2449_p13 = pnand %p2448_p8, %p2442_p12 }
 0x133   : > { %2452 = shalt.err (!%p2449_p13)
}
 0x134   : > { %s2453_s21 = scalar_lea.vmem %s3320_s28, 2048  ;;  %s2706_s27 = smov [#allocation11]  }
 0x135   : > { %p2454_p0 = scmp.ne.s32.totalorder %s3320_s28, %s2453_s21  ;;  %s2458_s18 = sshll.u32 %s2706_s27, 4  ;;  %s2459_s18 = int_to_ptr.vmem [resolvable:$false] %s2458_s18 }
 0x136   : > { %s2460_s0 = scalar_lea.vmem %s2459_s18, 4096  ;;  %p2461_p4 = scmp.lt.s32.totalorder %s3320_s28, %s2459_s18 }
 0x137   : > { %p2456_p3 = pnand %p2454_p0, %p2440_p9  ;;  %p2462_p7 = scmp.lt.s32.totalorder %s2460_s0, %s2453_s21 }
 0x139   : > { %p2457_p5 = pneg %p2456_p3  ;;  %p2463_p2 = por %p2462_p7, %p2461_p4 }
 0x13b   : > { %p2464_p11 = pnand %p2463_p2, %p2457_p5 }
 0x13d   : > { %2467 = shalt.err (!%p2464_p11)
}
 0x13e   : > { %2010 = dma.hbm_to_vmem [thread:$0]  (!%p3314_p1), %s3308_s17, 2048, %s3320_s28, %s3358_s6, %s3870_s26, %s3870_s26, %s3869_s13  }
 0x13f   : > { %s3873_s9 = sld [smem:[#allocation51_spill]] }
 0x145   : > { %p3874_p9 = scmp.ne.s32.totalorder %s3873_s9, 0 }
 0x146   : > { %s3875_s7 = sld [smem:[#allocation43_spill]] (!%p3874_p9)  ;;  %s3876_s8 = sld [smem:[#allocation59_spill]] (!%p3874_p9) }
 0x147   : > { %526 = sbr.rel (%p3874_p9) target bundleno = 1417 (0x589), region = 48 }
 0x14c   : > { %s528_s16 = sand.u32 (!%p3874_p9), 1, %s3875_s7   ;;  %p3877_p12 = scmp.ne.s32.totalorder (!%p3874_p9), %s3876_s8, 0 }
 0x14d   : > { %s529_s4 = scalar_lea.sflag (!%p3874_p9), [#allocation6], %s528_s16  ;;  %s3392_s14 = scalar_lea.vmem (!%p3874_p9), [#allocation5], %s528_s16 }
 0x14e   : > { %2587 = dma.done.wait (%p3877_p12), %s529_s4, 16  }
 0x14f   : > { %2589 = vsyncadd (%p3877_p12), %s529_s4, 4294967280  ;;  %s3878_s5 = sld [smem:[#allocation48_spill]]  ;;  %s3879_s10 = sld [smem:[#allocation41_spill]] }
 0x150   : > { %s3880_s2 = sld [smem:[#allocation55_spill]] }
 0x155   : > { %s536_s21 = sand.u32 1, %s3878_s5   ;;  %s538_s27 = sand.u32 1, %s3879_s10  }
 0x156   : > { %s1645_s28 = sshll.u32 %s538_s27, 7  ;;  %s537_s17 = scalar_lea.sflag [#allocation9], %s536_s21 }
 0x157   : > { %s3400_s13 = scalar_lea.vmem [#allocation8], %s1645_s28  ;;  %p3881_p1 = scmp.ne.s32.totalorder %s3880_s2, 0 }
 0x159   : > { %2591 = dma.done.wait (%p3881_p1), %s537_s17, 2048  }
 0x15a   : > { %2593 = vsyncadd (%p3881_p1), %s537_s17, 4294965248  ;;  %s547_s26 = sand.u32 1, %s2640_s29   ;;  %p3882_p10 = scmp.ne.s32.totalorder %s3846_s11, 0 }
 0x15b   : > { %s1646_s6 = sshll.u32 %s547_s26, 7 }
 0x15c   : > { %s3407_s18 = scalar_lea.vmem [#allocation10], %s1646_s6 }
 0x15d   : > { %2595 = dma.done.wait (%p3882_p10), %s537_s17, 2048  }
 0x15e   : > { %2597 = vsyncadd (%p3882_p10), %s537_s17, 4294965248  ;;  %s3883_s0 = sld [smem:[#allocation38_spill]]  ;;  %s555_s8 = scalar_lea.sflag [#allocation12], %s536_s21 }
 0x15f   : > { %p3884_p6 = scmp.ne.s32.totalorder %s3862_s12, 0 }
 0x164   : > { %s556_s9 = sand.u32 1, %s3883_s0  }
 0x165   : > { %s1647_s7 = sshll.u32 %s556_s9, 7 }
 0x166   : > { %s3414_s16 = scalar_lea.vmem [#allocation11], %s1647_s7 }
 0x167   : > { %2599 = dma.done.wait (%p3884_p6), %s555_s8, 2048  }
 0x168   : > { %2601 = vsyncadd (%p3884_p6), %s555_s8, 4294965248  ;;  %p3885_p8 = scmp.eq.s32.totalorder %s3878_s5, 0 }
 0x16a   : > { %2603 = dma.done.wait (%p3885_p8), [#allocation12], 2048   ;;  %p3886_p13 = pmov %p3885_p8 }
 0x16b   : > { %s3887_s11 = sld [smem:[#allocation46_spill]]  ;;  %s3888_s4 = sld [smem:[#allocation45_spill]] }
 0x16c   : > { %2605 = vsyncadd (%p3886_p13), [#allocation12], 4294965248  ;;  %s3889_s10 = sld [smem:[#allocation35_spill]] }
 0x16d   : > { %s3890_s2 = sld [smem:[#allocation44_spill]] }
 0x171   : > { %s1650_s21 = sshll.u32 %s3887_s11, 1  ;;  %p683_p0 = scmp.eq.s32.totalorder %s3888_s4, 0 }
 0x172   : > { %s625_s27 = sadd.s32 %s3888_s4, %s1650_s21  ;;  %s621_s12 = sand.u32 1, %s3889_s10  }
 0x173   : > { %s626_s28 = sld [smem:[#allocation4 + %s625_s27]]  ;;  %s1649_s17 = sshll.u32 %s621_s12, 3 }
 0x174   : > { %p684_p3 = scmp.eq.s32.totalorder %s3890_s2, 0  ;;  %s627_s6 = sld [smem:[#allocation3 + %s625_s27]] }
 0x175   : > { %p634_p7 = scmp.lt.s32.totalorder %s3888_s4, 1  ;;  %s3892_s10 = sld [smem:[#allocation61_spill]] }
 0x176   : > { %p3431_p5 = pnand %p684_p3, %p683_p0 }
 0x177   : > { %s3991_s4 = smov (!%p634_p7, %s3888_s4), 1  ;;  %v2707_v0 = vmov (!%p3431_p5), 0.0  }
 0x178   : > { %s1955_s9 = smul.u32 3, %s3991_s4 }
 0x179   : > { %s1651_s5 = sadd.s32 4294967295, %s626_s28  ;;  %s3445_s28 = scalar_lea.vmem [#allocation14], %s1649_s17 }
 0x17a   : > { %p629_p4 = scmp.gt.s32.totalorder %s1651_s5, 0  ;;  %689 = vst [vmem:[%s3445_s28] sm:$0xff] (!%p3431_p5), %v2707_v0 }
 0x17c   : > { %s3989_s5 = smov (!%p629_p4, %s1651_s5), 0 }
 0x17d   : > { %p631_p2 = scmp.lt.s32.totalorder %s3890_s2, %s3989_s5 }
 0x17f   : > { %s3993_s2 = smov (!%p631_p2, %s3890_s2), %s3989_s5  ;;  %688 = sbr.rel (%p3431_p5) target bundleno = 390 (0x186), region = 72 }
 0x180   : > { %s633_s0 = sadd.s32 %s3993_s2, %s627_s6 }
 0x181   : > { %p636_p11 = scmp.lt.s32.totalorder %s633_s0, 2 }
 0x183   : > { %s3995_s0 = smov (!%p636_p11, %s633_s0), 2 }
 0x184   : > { %s3439_s7 = sadd.s32 %s1955_s9, %s3995_s0 }
 0x185   : > { %s640_s21 = scalar_lea.vmem %s3892_s10, %s3439_s7 }
 0x186 PF: > { %s692_s2 = sld [smem:[#allocation4 + %s625_s27]] }
 0x187   : > { %s3893_s5 = sld [smem:[#allocation44_spill]] }
 0x18d   : > { %p1653_p9 = scmp.ge.s32.totalorder %s3893_s5, %s692_s2 }
 0x18e   : > { %v713_v1 = vld [vmem:[%s3414_s16] sm:$0xff] (!%p1653_p9)  ;;  %v714_v2 = vld [vmem:[%s3414_s16 + $0x8] sm:$0xff] (!%p1653_p9)  ;;  %v715_v3 = vld [vmem:[%s3414_s16 + $0x10] sm:$0xff] (!%p1653_p9)  ;;  %v2708_v41 = vmov (!%p1653_p9), 33   ;;  %v2709_v42 = vmov (!%p1653_p9), 32   ;;  %vm2711_vm0 = vmmov (!%p1653_p9), 0  }
 0x18f   : > { %696 = sbr.rel (%p1653_p9) target bundleno = 1109 (0x455), region = 76  ;;  %v1872_v4 = vpack.c.bf16 (!%p1653_p9), %v714_v2, %v713_v1  ;;  %v716_v5 = vld [vmem:[%s3414_s16 + $0x18] sm:$0xff] (!%p1653_p9)  ;;  %v717_v7 = vld [vmem:[%s3414_s16 + $0x20] sm:$0xff] (!%p1653_p9)  ;;  %v718_v8 = vld [vmem:[%s3414_s16 + $0x28] sm:$0xff] (!%p1653_p9)  ;;  %2210 = vset.pattern.permute.xlu1 (!%p1653_p9), %v2708_v41  ;;  %2209 = vset.pattern.permute.xlu0 (!%p1653_p9), %v2709_v42 }
 0x190   : > { %v1876_v6 = vpack.c.bf16 (!%p1653_p9), %v716_v5, %v715_v3  ;;  %v1880_v9 = vpack.c.bf16 (!%p1653_p9), %v718_v8, %v717_v7  ;;  %v697_v10 = vld [vmem:[%s3407_s18] sm:$0xff] (!%p1653_p9)  ;;  %v719_v11 = vld [vmem:[%s3414_s16 + $0x30] sm:$0xff] (!%p1653_p9)  ;;  %v720_v12 = vld [vmem:[%s3414_s16 + $0x38] sm:$0xff] (!%p1653_p9) }
 0x191   : > { %1873 = vmatprep.subr.bf16.mxu0 (!%p1653_p9), %v1872_v4  ;;  %1778 = vmatprep.mubr.f32.mxu0 (!%p1653_p9), %v697_v10  ;;  %v1884_v13 = vpack.c.bf16 (!%p1653_p9), %v720_v12, %v719_v11  ;;  %v721_v14 = vld [vmem:[%s3414_s16 + $0x40] sm:$0xff] (!%p1653_p9)  ;;  %v722_v15 = vld [vmem:[%s3414_s16 + $0x48] sm:$0xff] (!%p1653_p9)  ;;  %v723_v17 = vld [vmem:[%s3414_s16 + $0x50] sm:$0xff] (!%p1653_p9) }
 0x192   : > { %1875 = vmatpush3.bf16.msra.mxu0 (!%p1653_p9), %v1872_v4  ;;  %v1888_v16 = vpack.c.bf16 (!%p1653_p9), %v722_v15, %v721_v14  ;;  %v724_v18 = vld [vmem:[%s3414_s16 + $0x58] sm:$0xff] (!%p1653_p9)  ;;  %v725_v20 = vld [vmem:[%s3414_s16 + $0x60] sm:$0xff] (!%p1653_p9)  ;;  %v726_v21 = vld [vmem:[%s3414_s16 + $0x68] sm:$0xff] (!%p1653_p9) }
 0x193   : > { %1877 = vmatprep.subr.bf16.mxu0 (!%p1653_p9), %v1876_v6  ;;  %v1892_v19 = vpack.c.bf16 (!%p1653_p9), %v724_v18, %v723_v17  ;;  %v1896_v22 = vpack.c.bf16 (!%p1653_p9), %v726_v21, %v725_v20  ;;  %v727_v23 = vld [vmem:[%s3414_s16 + $0x70] sm:$0xff] (!%p1653_p9)  ;;  %v728_v24 = vld [vmem:[%s3414_s16 + $0x78] sm:$0xff] (!%p1653_p9)  ;;  %v698_v26 = vld [vmem:[%s3407_s18 + $0x8] sm:$0xff] (!%p1653_p9) }
 0x194   : > { %v1900_v25 = vpack.c.bf16 (!%p1653_p9), %v728_v24, %v727_v23  ;;  %v699_v27 = vld [vmem:[%s3407_s18 + $0x10] sm:$0xff] (!%p1653_p9)  ;;  %v700_v28 = vld [vmem:[%s3407_s18 + $0x18] sm:$0xff] (!%p1653_p9)  ;;  %v701_v29 = vld [vmem:[%s3407_s18 + $0x20] sm:$0xff] (!%p1653_p9)  ;;  %v2710_v23 = vmov (!%p1653_p9), 0.0|0.0  }
 0x195   : > { %v702_v30 = vld [vmem:[%s3407_s18 + $0x28] sm:$0xff] (!%p1653_p9)  ;;  %v703_v31 = vld [vmem:[%s3407_s18 + $0x30] sm:$0xff] (!%p1653_p9)  ;;  %v704_v32 = vld [vmem:[%s3407_s18 + $0x38] sm:$0xff] (!%p1653_p9)  ;;  %1904 = vmatprep.subr.bf16.mxu1 (!%p1653_p9), %v2710_v23 }
 0x196   : > { %1879 = vmatpush3.bf16.msra.mxu0 %v1876_v6  ;;  %v705_v33 = vld [vmem:[%s3407_s18 + $0x40] sm:$0xff]  ;;  %v706_v34 = vld [vmem:[%s3407_s18 + $0x48] sm:$0xff]  ;;  %v707_v35 = vld [vmem:[%s3407_s18 + $0x50] sm:$0xff] }
 0x197   : > { %1881 = vmatprep.subr.bf16.mxu0 %v1880_v9  ;;  %v708_v36 = vld [vmem:[%s3407_s18 + $0x58] sm:$0xff]  ;;  %v709_v37 = vld [vmem:[%s3407_s18 + $0x60] sm:$0xff]  ;;  %v710_v38 = vld [vmem:[%s3407_s18 + $0x68] sm:$0xff] }
 0x198   : > { %v711_v39 = vld [vmem:[%s3407_s18 + $0x70] sm:$0xff]  ;;  %v712_v40 = vld [vmem:[%s3407_s18 + $0x78] sm:$0xff]  ;;  %s3894_s18 = sld [smem:[#allocation46_spill]] }
 0x19a   : > { %1883 = vmatpush3.bf16.msra.mxu0 %v1880_v9 }
 0x19b   : > { %1885 = vmatprep.subr.bf16.mxu0 %v1884_v13 }
 0x19e   : > { %1887 = vmatpush3.bf16.msra.mxu0 %v1884_v13  ;;  %s1670_s16 = sshll.u32 %s3894_s18, 3 }
 0x19f   : > { %1889 = vmatprep.subr.bf16.mxu0 %v1888_v16 }
 0x1a2   : > { %1891 = vmatpush3.bf16.msra.mxu0 %v1888_v16 }
 0x1a3   : > { %1893 = vmatprep.subr.bf16.mxu0 %v1892_v19 }
 0x1a6   : > { %1895 = vmatpush3.bf16.msra.mxu0 %v1892_v19 }
 0x1a7   : > { %1897 = vmatprep.subr.bf16.mxu0 %v1896_v22 }
 0x1aa   : > { %1899 = vmatpush3.bf16.msra.mxu0 %v1896_v22 }
 0x1ab   : > { %1901 = vmatprep.subr.bf16.mxu0 %v1900_v25 }
 0x1ae   : > { %1903 = vmatpush3.bf16.msra.mxu0 %v1900_v25 }
 0x1b1   : > { %1779 = vmatmul.mubr.f32.vlgmr.msra.gmra.mrb[0].mxu0 %v698_v26 }
 0x1b2   : > { %1781 = vmatprep.mubr.f32.mxu0 %v699_v27 }
 0x1b5   : > { %1782 = vmatmul.mubr.f32.gmra.mrb[2].mxu0 %v700_v28 }
 0x1b6   : > { %1784 = vmatprep.mubr.f32.mxu0 %v701_v29 }
 0x1b9   : > { %1785 = vmatmul.mubr.f32.gmra.mrb[4].mxu0 %v702_v30 }
 0x1ba   : > { %1787 = vmatprep.mubr.f32.mxu0 %v703_v31 }
 0x1bd   : > { %1788 = vmatmul.mubr.f32.gmra.mrb[6].mxu0 %v704_v32 }
 0x1be   : > { %1790 = vmatprep.mubr.f32.mxu0 %v705_v33 }
 0x1c1   : > { %1791 = vmatmul.mubr.f32.gmra.mrb[8].mxu0 %v706_v34 }
 0x1c2   : > { %1793 = vmatprep.mubr.f32.mxu0 %v707_v35 }
 0x1c5   : > { %1794 = vmatmul.mubr.f32.gmra.mrb[10].mxu0 %v708_v36 }
 0x1c6   : > { %1796 = vmatprep.mubr.f32.mxu0 %v709_v37 }
 0x1c9   : > { %1797 = vmatmul.mubr.f32.gmra.mrb[12].mxu0 %v710_v38 }
 0x1ca   : > { %1799 = vmatprep.mubr.f32.mxu0 %v711_v39 }
 0x1cd   : > { %1800 = vmatmul.mubr.f32.gmra.mrb[14].mxu0 %v712_v40 }
 0x284   : > { %v3485_v43 = vpop.f32.mrb[0].mxu0 }
 0x285   : > { %v1655_v44 = vmul.f32 -1.442695, %v3485_v43  ;;  %v3488_v45 = vpop.f32.mrb[1].mxu0 }
 0x286   : > { %v1654_v46 = vmul.f32 -1.442695, %v3488_v45 }
 0x287   : > { %2232 = vpow2.f32 %v1655_v44 }
 0x288   : > { %2234 = vpow2.f32 %v1654_v46  ;;  %v3491_v47 = vpop.f32.mrb[2].mxu0 }
 0x289   : > { %v1657_v48 = vmul.f32 -1.442695, %v3491_v47  ;;  %v3494_v49 = vpop.f32.mrb[3].mxu0 }
 0x28a   : > { %v1656_v50 = vmul.f32 -1.442695, %v3494_v49 }
 0x28b   : > { %2236 = vpow2.f32 %v1657_v48 }
 0x28c   : > { %2238 = vpow2.f32 %v1656_v50  ;;  %v3497_v51 = vpop.f32.mrb[4].mxu0 }
 0x28d   : > { %v3499_v52 = vpop.f32.mrb[5].mxu0  ;;  %v1659_v53 = vmul.f32 -1.442695, %v3497_v51 }
 0x28e   : > { %v1658_v63 = vmul.f32 -1.442695, %v3499_v52 }
 0x28f   : > { %2240 = vpow2.f32 %v1659_v53 }
 0x290   : > { %v3502_v54 = vpop.f32.mrb[6].mxu0 }
 0x291   : > { %v2233_v55 = vpop.eup %2232  ;;  %v3504_v56 = vpop.f32.mrb[7].mxu0  ;;  %v1661_v6 = vmul.f32 -1.442695, %v3502_v54 }
 0x292   : > { %v2235_v57 = vpop.eup %2234  ;;  %v923_v58 = vadd.f32 1.0, %v2233_v55  ;;  %v1660_v59 = vmul.f32 -1.442695, %v3504_v56 }
 0x293   : > { %v922_v60 = vadd.f32 1.0, %v2235_v57 }
 0x294   : > { %2242 = vrcp.f32 %v923_v58  ;;  %v3507_v61 = vpop.f32.mrb[8].mxu0 }
 0x295   : > { %v2237_v62 = vpop.eup %2236  ;;  %v3510_v0 = vpop.f32.mrb[9].mxu0  ;;  %2244 = vpow2.f32 %v1660_v59  ;;  %v1663_v9 = vmul.f32 -1.442695, %v3507_v61 }
 0x296   : > { %v2239_v1 = vpop.eup %2238  ;;  %v925_v2 = vadd.f32 1.0, %v2237_v62  ;;  %2246 = vrcp.f32 %v922_v60  ;;  %v1662_v27 = vmul.f32 -1.442695, %v3510_v0 }
 0x297   : > { %v924_v3 = vadd.f32 1.0, %v2239_v1  ;;  %2248 = vpow2.f32 %v1658_v63 }
 0x298   : > { %v3512_v4 = vpop.f32.mrb[10].mxu0 }
 0x299   : > { %v3514_v5 = vpop.f32.mrb[11].mxu0  ;;  %2250 = vrcp.f32 %v924_v3  ;;  %v2241_v8 = vpop.eup %2240  ;;  %v1665_v36 = vmul.f32 -1.442695, %v3512_v4 }
 0x29a   : > { %2252 = vrcp.f32 %v925_v2  ;;  %v927_v12 = vadd.f32 1.0, %v2241_v8  ;;  %v1664_v15 = vmul.f32 -1.442695, %v3514_v5 }
 0x29b   : > { %2254 = vpow2.f32 %v1661_v6 }
 0x29c   : > { %v3517_v7 = vpop.f32.mrb[12].mxu0  ;;  %2256 = vpow2.f32 %v1663_v9 }
 0x29d   : > { %v3520_v10 = vpop.f32.mrb[13].mxu0  ;;  %2258 = vrcp.f32 %v927_v12  ;;  %v1667_v26 = vmul.f32 -1.442695, %v3517_v7  ;;  %v2712_v12 = vmov 0.0  }
 0x29e   : > { %v2243_v11 = vpop.eup %2242  ;;  %2260 = vpow2.f32 %v1664_v15  ;;  %v1666_v57 = vmul.f32 -1.442695, %v3520_v10  ;;  %1834 = vmatprep.mubr.msk.f32.mxu1 %vm2711_vm0, %v2712_v12  ;;  %v971_v15 = vld [vmem:[%s3400_s13 + $0x8] sm:$0xff] }
 0x29f   : > { %1087 = vperm.xlu1 %2210, %v2243_v11   ;;  %993 = vperm.xlu0 %2209, %v2243_v11   ;;  %v2245_v14 = vpop.eup %2244 }
 0x2a0   : > { %v3522_v13 = vpop.f32.mrb[14].mxu0  ;;  %v2247_v17 = vpop.eup %2246  ;;  %v928_v20 = vadd.f32 1.0, %v2245_v14 }
 0x2a1   : > { %v3525_v16 = vpop.f32.mrb[15].mxu0  ;;  %v2249_v18 = vpop.eup %2248  ;;  %v1669_v63 = vmul.f32 -1.442695, %v3522_v13 }
 0x2a2   : > { %v926_v22 = vadd.f32 1.0, %v2249_v18  ;;  %2262 = vrcp.f32 %v928_v20  ;;  %v1668_v32 = vmul.f32 -1.442695, %v3525_v16  ;;  %v970_v18 = vld [vmem:[%s3400_s13] sm:$0xff] }
 0x2a3   : > { %1083 = vperm.xlu1 %2210, %v2247_v17   ;;  %988 = vperm.xlu0 %2209, %v2247_v17   ;;  %v2251_v19 = vpop.eup %2250 }
 0x2a4   : > { %v2253_v21 = vpop.eup %2252  ;;  %2264 = vrcp.f32 %v926_v22 }
 0x2a5   : > { %v2255_v24 = vpop.eup %2254  ;;  %2266 = vpow2.f32 %v1667_v26 }
 0x2a6   : > { %v2257_v25 = vpop.eup %2256  ;;  %v929_v28 = vadd.f32 1.0, %v2255_v24  ;;  %2268 = vpow2.f32 %v1662_v27 }
 0x2a7   : > { %2211 = vset.pattern.permute.xlu1 %v2709_v42  ;;  %998 = vperm.xlu0 %2209, %v2251_v19   ;;  %v2259_v29 = vpop.eup %2258  ;;  %v931_v30 = vadd.f32 1.0, %v2257_v25 }
 0x2a8   : > { %1003 = vperm.xlu1 %2211, %v2253_v21   ;;  %v2261_v31 = vpop.eup %2260  ;;  %2270 = vrcp.f32 %v929_v28 }
 0x2a9   : > { %2272 = vrcp.f32 %v931_v30  ;;  %v932_v34 = vadd.f32 1.0, %v2261_v31  ;;  %v973_v30 = vld [vmem:[%s3400_s13 + $0x18] sm:$0xff] }
 0x2aa   : > { %2274 = vpow2.f32 %v1668_v32 }
 0x2ab   : > { %2213 = vset.pattern.permute.xlu0 %v2708_v41  ;;  %2276 = vrcp.f32 %v932_v34 }
 0x2ac   : > { %2212 = vset.pattern.permute.xlu1 %v2708_v41  ;;  %1091 = vperm.xlu0 %2213, %v2251_v19   ;;  %v2263_v33 = vpop.eup %2262  ;;  %2278 = vpow2.f32 %v1665_v36 }
 0x2ad   : > { %1095 = vperm.xlu1 %2212, %v2253_v21  }
 0x2ae   : > { %v2265_v35 = vpop.eup %2264 }
 0x2af   : > { %v2267_v37 = vpop.eup %2266 }
 0x2b0   : > { %2214 = vset.pattern.permute.xlu0 %v2709_v42  ;;  %v2269_v38 = vpop.eup %2268  ;;  %v935_v44 = vadd.f32 1.0, %v2267_v37 }
 0x2b1   : > { %1103 = vperm.xlu1 %2212, %v2259_v29   ;;  %1013 = vperm.xlu0 %2214, %v2259_v29   ;;  %v930_v48 = vadd.f32 1.0, %v2269_v38  ;;  %v972_v29 = vld [vmem:[%s3400_s13 + $0x10] sm:$0xff] }
 0x2b2   : > { %v2271_v39 = vpop.eup %2270  ;;  %2280 = vrcp.f32 %v935_v44  ;;  %v975_v44 = vld [vmem:[%s3400_s13 + $0x28] sm:$0xff] }
 0x2b3   : > { %v2273_v40 = vpop.eup %2272  ;;  %2282 = vrcp.f32 %v930_v48 }
 0x2b4   : > { %v2275_v46 = vpop.eup %2274 }
 0x2b5   : > { %2215 = vset.pattern.permute.xlu1 %v2709_v42  ;;  %1018 = vperm.xlu0 %2214, %v2263_v33   ;;  %v2277_v50 = vpop.eup %2276  ;;  %v936_v53 = vadd.f32 1.0, %v2275_v46  ;;  %v974_v46 = vld [vmem:[%s3400_s13 + $0x20] sm:$0xff] }
 0x2b6   : > { %1008 = vperm.xlu1 %2215, %v2265_v35   ;;  %v2279_v55 = vpop.eup %2278 }
 0x2b7   : > { %2284 = vrcp.f32 %v936_v53  ;;  %v933_v58 = vadd.f32 1.0, %v2279_v55 }
 0x2b8   : > { %2286 = vpow2.f32 %v1666_v57 }
 0x2b9   : > { %2219 = vset.pattern.permute.xlu0 %v2708_v41  ;;  %2288 = vrcp.f32 %v933_v58 }
 0x2ba   : > { %2216 = vset.pattern.permute.xlu1 %v2708_v41  ;;  %1107 = vperm.xlu0 %2219, %v2263_v33   ;;  %2290 = vpow2.f32 %v1669_v63 }
 0x2bb   : > { %1099 = vperm.xlu1 %2216, %v2265_v35  }
 0x2bc   : > { %v2281_v59 = vpop.eup %2280 }
 0x2bd   : > { %v2283_v60 = vpop.eup %2282 }
 0x2be   : > { %2220 = vset.pattern.permute.xlu0 %v2709_v42 }
 0x2bf   : > { %2217 = vset.pattern.permute.xlu1 %v2709_v42  ;;  %1033 = vperm.xlu0 %2220, %v2273_v40  }
 0x2c0   : > { %1023 = vperm.xlu1 %2217, %v2271_v39  }
 0x2c1   : > { %v2285_v62 = vpop.eup %2284 }
 0x2c2   : > { %v2287_v1 = vpop.eup %2286 }
 0x2c3   : > { %1038 = vperm.xlu0 %2220, %v2277_v50   ;;  %v2289_v2 = vpop.eup %2288  ;;  %v934_v3 = vadd.f32 1.0, %v2287_v1  ;;  %v977_v1 = vld [vmem:[%s3400_s13 + $0x38] sm:$0xff] }
 0x2c4   : > { %2218 = vset.pattern.permute.xlu1 %v2708_v41  ;;  %v2291_v6 = vpop.eup %2290 }
 0x2c5   : > { %1111 = vperm.xlu1 %2218, %v2271_v39   ;;  %2292 = vrcp.f32 %v934_v3  ;;  %v937_v8 = vadd.f32 1.0, %v2291_v6 }
 0x2c7   : > { %2225 = vset.pattern.permute.xlu0 %v2708_v41  ;;  %2294 = vrcp.f32 %v937_v8 }
 0x2c8   : > { %1123 = vperm.xlu0 %2225, %v2277_v50  }
 0x2c9   : > { %1119 = vperm.xlu1 %2218, %v2273_v40  }
 0x2cc   : > { %2226 = vset.pattern.permute.xlu0 %v2709_v42 }
 0x2cd   : > { %2221 = vset.pattern.permute.xlu1 %v2709_v42  ;;  %1053 = vperm.xlu0 %2226, %v2281_v59  }
 0x2ce   : > { %1028 = vperm.xlu1 %2221, %v2283_v60  }
 0x2cf   : > { %v2293_v9 = vpop.eup %2292 }
 0x2d1   : > { %1058 = vperm.xlu0 %2226, %v2285_v62   ;;  %v2295_v11 = vpop.eup %2294 }
 0x2d2   : > { %2222 = vset.pattern.permute.xlu1 %v2708_v41 }
 0x2d3   : > { %1115 = vperm.xlu1 %2222, %v2283_v60  }
 0x2d5   : > { %2230 = vset.pattern.permute.xlu0 %v2708_v41 }
 0x2d6   : > { %1139 = vperm.xlu0 %2230, %v2285_v62   ;;  %v976_v62 = vld [vmem:[%s3400_s13 + $0x30] sm:$0xff] }
 0x2d7   : > { %2223 = vset.pattern.permute.xlu1 %v2709_v42 }
 0x2d8   : > { %1043 = vperm.xlu1 %2223, %v2289_v2  }
 0x2dc   : > { %2224 = vset.pattern.permute.xlu1 %v2708_v41 }
 0x2dd   : > { %1127 = vperm.xlu1 %2224, %v2289_v2  }
 0x2e1   : > { %1135 = vperm.xlu1 %2224, %v2281_v59  }
 0x2e5   : > { %2227 = vset.pattern.permute.xlu1 %v2709_v42 }
 0x2e6   : > { %1048 = vperm.xlu1 %2227, %v2293_v9  }
 0x2ea   : > { %2228 = vset.pattern.permute.xlu1 %v2708_v41 }
 0x2eb   : > { %1131 = vperm.xlu1 %2228, %v2293_v9  }
 0x2ef   : > { %2229 = vset.pattern.permute.xlu1 %v2709_v42 }
 0x2f0   : > { %1063 = vperm.xlu1 %2229, %v2295_v11  }
 0x2f4   : > { %2231 = vset.pattern.permute.xlu1 %v2708_v41 }
 0x2f5   : > { %1143 = vperm.xlu1 %2231, %v2295_v11  }
 0x31e   : > { %v1088_v14 = vpop.permute.xlu1 %1087  ;;  %v994_v17 = vpop.permute.xlu0 %993 }
 0x31f   : > { %v1147_v19 = vmul.f32 %v3485_v43, %v1088_v14  ;;  %v1067_v20 = vmul.f32 %v994_v17, %v971_v15  ;;  %v979_v17 = vld [vmem:[%s3400_s13 + $0x48] sm:$0xff] }
 0x321   : > { %v1163_v25 = vadd.f32 %v1147_v19, %v1067_v20 }
 0x322   : > { %v1084_v21 = vpop.permute.xlu1 %1083  ;;  %v989_v22 = vpop.permute.xlu0 %988 }
 0x323   : > { %v1146_v42 = vmul.f32 %v1084_v21, %v3488_v45  ;;  %v1066_v24 = vmul.f32 %v989_v22, %v970_v18  ;;  %v978_v18 = vld [vmem:[%s3400_s13 + $0x40] sm:$0xff] }
 0x325   : > { %v1162_v41 = vadd.f32 %v1146_v42, %v1066_v24 }
 0x326   : > { %v999_v26 = vpop.permute.xlu0 %998 }
 0x327   : > { %v1004_v27 = vpop.permute.xlu1 %1003  ;;  %v1905_v28 = vpack.c.bf16 %v1163_v25, %v1162_v41  ;;  %v1068_v43 = vmul.f32 %v999_v26, %v972_v29  ;;  %v980_v26 = vld [vmem:[%s3400_s13 + $0x50] sm:$0xff] }
 0x328   : > { %v1069_v34 = vmul.f32 %v1004_v27, %v973_v30 }
 0x329   : > { %1906 = vmatpush3.bf16.msra.mxu1 %v1905_v28  ;;  %v981_v28 = vld [vmem:[%s3400_s13 + $0x58] sm:$0xff] }
 0x32a   : > { %1907 = vmatprep.subr.bf16.mxu1 %v2710_v23 }
 0x32b   : > { %v1092_v31 = vpop.permute.xlu0 %1091 }
 0x32c   : > { %v1148_v32 = vmul.f32 %v1092_v31, %v3494_v49  ;;  %v1096_v33 = vpop.permute.xlu1 %1095 }
 0x32d   : > { %v1149_v45 = vmul.f32 %v3491_v47, %v1096_v33 }
 0x32e   : > { %v1164_v35 = vadd.f32 %v1148_v32, %v1068_v43 }
 0x32f   : > { %v1165_v36 = vadd.f32 %v1149_v45, %v1069_v34 }
 0x330   : > { %v1104_v37 = vpop.permute.xlu1 %1103  ;;  %v1014_v39 = vpop.permute.xlu0 %1013 }
 0x331   : > { %v1908_v38 = vpack.c.bf16 %v1165_v36, %v1164_v35  ;;  %v1151_v48 = vmul.f32 %v3497_v51, %v1104_v37  ;;  %v1071_v49 = vmul.f32 %v1014_v39, %v975_v44  ;;  %v983_v36 = vld [vmem:[%s3400_s13 + $0x68] sm:$0xff]  ;;  %v982_v37 = vld [vmem:[%s3400_s13 + $0x60] sm:$0xff] }
 0x333   : > { %1909 = vmatpush3.bf16.msra.mxu1 %v1908_v38  ;;  %v1167_v57 = vadd.f32 %v1151_v48, %v1071_v49 }
 0x334   : > { %1910 = vmatprep.subr.bf16.mxu1 %v2710_v23  ;;  %v1019_v50 = vpop.permute.xlu0 %1018 }
 0x335   : > { %v1009_v40 = vpop.permute.xlu1 %1008  ;;  %v1072_v2 = vmul.f32 %v1019_v50, %v976_v62 }
 0x336   : > { %v1070_v55 = vmul.f32 %v1009_v40, %v974_v46  ;;  %v1182_v46 = vlaneseq }
 0x339   : > { %v1108_v63 = vpop.permute.xlu0 %1107 }
 0x33a   : > { %v1100_v53 = vpop.permute.xlu1 %1099  ;;  %v1152_v51 = vmul.f32 %v1108_v63, %v3504_v56 }
 0x33b   : > { %v1150_v47 = vmul.f32 %v1100_v53, %v3499_v52 }
 0x33c   : > { %v1168_v52 = vadd.f32 %v1152_v51, %v1072_v2 }
 0x33d   : > { %v1166_v58 = vadd.f32 %v1150_v47, %v1070_v55  ;;  %v1183_v55 = vshrl.u32 %v1182_v46, 7  ;;  %v984_v47 = vld [vmem:[%s3400_s13 + $0x70] sm:$0xff] }
 0x33e   : > { %v1034_v14 = vpop.permute.xlu0 %1033 }
 0x33f   : > { %v1024_v59 = vpop.permute.xlu1 %1023  ;;  %v1911_v60 = vpack.c.bf16 %v1167_v57, %v1166_v58  ;;  %v1075_v19 = vmul.f32 %v1034_v14, %v979_v17  ;;  %v1180_v58 = vstv %s1670_s16  ;;  %v1186_v63 = vsub.s32 0, %v1183_v55 }
 0x340   : > { %v1073_v6 = vmul.f32 %v1024_v59, %v977_v1  ;;  %v985_v59 = vld [vmem:[%s3400_s13 + $0x78] sm:$0xff] }
 0x341   : > { %1912 = vmatpush3.bf16.msra.mxu1 %v1911_v60 }
 0x342   : > { %1913 = vmatprep.subr.bf16.mxu1 %v2710_v23  ;;  %v1039_v20 = vpop.permute.xlu0 %1038 }
 0x343   : > { %v1076_v29 = vmul.f32 %v1039_v20, %v980_v26 }
 0x344   : > { %v1112_v3 = vpop.permute.xlu1 %1111 }
 0x345   : > { %v1153_v8 = vmul.f32 %v3502_v54, %v1112_v3 }
 0x347   : > { %v1169_v9 = vadd.f32 %v1153_v8, %v1073_v6  ;;  %v1124_v27 = vpop.permute.xlu0 %1123 }
 0x348   : > { %v1120_v11 = vpop.permute.xlu1 %1119 }
 0x349   : > { %v1914_v12 = vpack.c.bf16 %v1169_v9, %v1168_v52  ;;  %v1155_v56 = vmul.f32 %v3507_v61, %v1120_v11  ;;  %v1156_v61 = vmul.f32 %v1124_v27, %v3514_v5  ;;  %v1671_v9 = vld [vmem:[%s3392_s14] ss:$0 sm:$0xff] }
 0x34b   : > { %1915 = vmatpush3.bf16.msra.mxu1 %v1914_v12  ;;  %v1171_v42 = vadd.f32 %v1155_v56, %v1075_v19 }
 0x34c   : > { %1916 = vmatprep.subr.bf16.mxu1 %v2710_v23  ;;  %v1054_v45 = vpop.permute.xlu0 %1053 }
 0x34d   : > { %v1029_v15 = vpop.permute.xlu1 %1028  ;;  %v1079_v38 = vmul.f32 %v1054_v45, %v983_v36 }
 0x34e   : > { %v1074_v22 = vmul.f32 %v1029_v15, %v978_v18 }
 0x350   : > { %v1059_v39 = vpop.permute.xlu0 %1058 }
 0x352   : > { %v1116_v21 = vpop.permute.xlu1 %1115 }
 0x353   : > { %v1154_v54 = vmul.f32 %v1116_v21, %v3510_v0  ;;  %v1172_v0 = vadd.f32 %v1156_v61, %v1076_v29 }
 0x355   : > { %v1170_v24 = vadd.f32 %v1154_v54, %v1074_v22  ;;  %v1140_v57 = vpop.permute.xlu0 %1139 }
 0x356   : > { %v1160_v60 = vmul.f32 %v1140_v57, %v3525_v16 }
 0x357   : > { %v1044_v25 = vpop.permute.xlu1 %1043  ;;  %v1917_v41 = vpack.c.bf16 %v1171_v42, %v1170_v24 }
 0x358   : > { %v1077_v31 = vmul.f32 %v1044_v25, %v981_v28 }
 0x359   : > { %1918 = vmatpush3.bf16.msra.mxu1 %v1917_v41 }
 0x35a   : > { %1919 = vmatprep.subr.bf16.mxu1 %v2710_v23 }
 0x35c   : > { %v1128_v30 = vpop.permute.xlu1 %1127 }
 0x35d   : > { %v1157_v43 = vmul.f32 %v3512_v4, %v1128_v30 }
 0x35f   : > { %v1173_v32 = vadd.f32 %v1157_v43, %v1077_v31 }
 0x360   : > { %v1136_v33 = vpop.permute.xlu1 %1135 }
 0x361   : > { %v1920_v34 = vpack.c.bf16 %v1173_v32, %v1172_v0  ;;  %v1159_v5 = vmul.f32 %v3517_v7, %v1136_v33  ;;  %v1178_v7 = vld [vmem:[%s640_s21] sm:$0x1] }
 0x362   : > { %v1181_v62 = vsub.s32 %v1178_v7, %v1180_v58 }
 0x363   : > { %1921 = vmatpush3.bf16.msra.mxu1 %v1920_v34  ;;  %v1175_v48 = vadd.f32 %v1159_v5, %v1079_v38 }
 0x364   : > { %1922 = vmatprep.subr.bf16.mxu1 %v2710_v23  ;;  %v1187_v8 = vrot.slane %v1181_v62, %v1186_v63 }
 0x365   : > { %v1049_v35 = vpop.permute.xlu1 %1048 }
 0x366   : > { %v1078_v40 = vmul.f32 %v1049_v35, %v982_v37  ;;  %vm1188_vm1 = vcmp.eq.s32.totalorder %v1183_v55, %v1187_v8 }
 0x36a   : > { %v1132_v4 = vpop.permute.xlu1 %1131 }
 0x36b   : > { %v1158_v44 = vmul.f32 %v1132_v4, %v3520_v10  ;;  %v1080_v10 = vmul.f32 %v1059_v39, %v984_v47 }
 0x36d   : > { %v1174_v49 = vadd.f32 %v1158_v44, %v1078_v40  ;;  %v1176_v3 = vadd.f32 %v1160_v60, %v1080_v10 }
 0x36f   : > { %v1064_v50 = vpop.permute.xlu1 %1063  ;;  %v1923_v53 = vpack.c.bf16 %v1175_v48, %v1174_v49 }
 0x370   : > { %v1081_v2 = vmul.f32 %v1064_v50, %v985_v59 }
 0x371   : > { %1924 = vmatpush3.bf16.msra.mxu1 %v1923_v53 }
 0x372   : > { %1925 = vmatprep.subr.bf16.mxu1 %v2710_v23  ;;  %v1197_v23 = vld [vmem:[%s3445_s28] sm:$0xff] }
 0x374   : > { %v1144_v1 = vpop.permute.xlu1 %1143 }
 0x375   : > { %v1161_v51 = vmul.f32 %v3522_v13, %v1144_v1 }
 0x377   : > { %v1177_v6 = vadd.f32 %v1161_v51, %v1081_v2 }
 0x379   : > { %v1926_v52 = vpack.c.bf16 %v1177_v6, %v1176_v3 }
 0x37b   : > { %1927 = vmatpush3.bf16.msra.mxu1 %v1926_v52 }
 0x37e   : > { %1835 = vmatmul.mubr.msk.f32.vlgmr.msra.gmra.mrb[0].mxu1 %vm1188_vm1, %v1671_v9 }
 0x451   : > { %v1264_v11 = vpop.f32.mrb[0].mxu1 }
 0x452   : > { %v1268_v12 = vadd.f32 %v1264_v11, %v1197_v23  ;;  %v1836_v14 = vpop.f32.mrb[1].mxu1 }
 0x454   : > { %1269 = vst [vmem:[%s3445_s28] sm:$0xff] %v1268_v12 }
 0x455 PF: > { %s3896_s13 = sld [smem:[#allocation45_spill]]  ;;  %s3897_s26 = sld [smem:[#allocation44_spill]] }
 0x45b   : > { %p1270_p12 = scmp.eq.s32.totalorder %s3896_s13, 1  ;;  %p1271_p1 = scmp.eq.s32.totalorder %s3897_s26, 1 }
 0x45d   : > { %p1272_p10 = pnand %p1271_p1, %p1270_p12 }
 0x45e   : > { %v1314_v13 = vld [vmem:[#allocation13] sm:$0xff] (!%p1272_p10)  ;;  %v1315_v16 = vld [vmem:[#allocation13 + $0x8] sm:$0xff] (!%p1272_p10)  ;;  %v1316_v15 = vld [vmem:[#allocation13 + $0x10] sm:$0xff] (!%p1272_p10)  ;;  %v1277_v17 = vlaneseq (!%p1272_p10)  ;;  %v2713_v18 = vmov (!%p1272_p10), 0.0|0.0   ;;  %vm2714_vm2 = vmmov (!%p1272_p10), 0   ;;  %v2715_v20 = vmov (!%p1272_p10), 0.0  }
 0x45f   : > { %1275 = sbr.rel (%p1272_p10) target bundleno = 1390 (0x56e), region = 80  ;;  %1928 = vmatprep.subr.bf16.mxu0 (!%p1272_p10), %v2713_v18  ;;  %v1929_v19 = vpack.c.bf16 (!%p1272_p10), %v1315_v16, %v1314_v13  ;;  %v1317_v56 = vld [vmem:[#allocation13 + $0x18] sm:$0xff] (!%p1272_p10)  ;;  %1869 = vmatprep.mubr.msk.f32.mxu0 (!%p1272_p10), %vm2714_vm2, %v2715_v20  ;;  %v1318_v54 = vld [vmem:[#allocation13 + $0x20] sm:$0xff] (!%p1272_p10)  ;;  %v1319_v42 = vld [vmem:[#allocation13 + $0x28] sm:$0xff] (!%p1272_p10)  ;;  %s3898_s0 = sld [smem:[#allocation67_spill]] (!%p1272_p10) }
 0x460   : > { %v1278_v21 = vand.u32 (!%p1272_p10), 127, %v1277_v17  ;;  %v1932_v22 = vpack.c.bf16 (!%p1272_p10), %v1317_v56, %v1316_v15  ;;  %v1276_v24 = vld [vmem:[%s3445_s28] sm:$0xff] (!%p1272_p10)  ;;  %v1935_v41 = vpack.c.bf16 (!%p1272_p10), %v1319_v42, %v1318_v54  ;;  %v1320_v27 = vld [vmem:[#allocation13 + $0x30] sm:$0xff] (!%p1272_p10)  ;;  %v1321_v28 = vld [vmem:[#allocation13 + $0x38] sm:$0xff] (!%p1272_p10) }
 0x461   : > { %1930 = vmatpush3.bf16.msra.mxu0 (!%p1272_p10), %v1929_v19  ;;  %v1938_v61 = vpack.c.bf16 (!%p1272_p10), %v1321_v28, %v1320_v27  ;;  %v1322_v31 = vld [vmem:[#allocation13 + $0x40] sm:$0xff] (!%p1272_p10)  ;;  %v1323_v43 = vld [vmem:[#allocation13 + $0x48] sm:$0xff] (!%p1272_p10)  ;;  %v1324_v45 = vld [vmem:[#allocation13 + $0x50] sm:$0xff] (!%p1272_p10) }
 0x462   : > { %1931 = vmatprep.subr.bf16.mxu0 (!%p1272_p10), %v2713_v18  ;;  %vm1279_vm3 = vcmp.lt.s32.totalorder (!%p1272_p10), %v1278_v21, 32  ;;  %v1941_v32 = vpack.c.bf16 (!%p1272_p10), %v1323_v43, %v1322_v31  ;;  %v1325_v35 = vld [vmem:[#allocation13 + $0x58] sm:$0xff] (!%p1272_p10)  ;;  %v1326_v39 = vld [vmem:[#allocation13 + $0x60] sm:$0xff] (!%p1272_p10)  ;;  %v1327_v4 = vld [vmem:[#allocation13 + $0x68] sm:$0xff] (!%p1272_p10) }
 0x463   : > { %v1280_v25 = vsel (!%p1272_p10), %vm1279_vm3, %v1276_v24, 0.0  ;;  %v1944_v38 = vpack.c.bf16 (!%p1272_p10), %v1325_v35, %v1324_v45  ;;  %v1947_v46 = vpack.c.bf16 (!%p1272_p10), %v1327_v4, %v1326_v39  ;;  %v1328_v49 = vld [vmem:[#allocation13 + $0x70] sm:$0xff] (!%p1272_p10)  ;;  %v1329_v50 = vld [vmem:[#allocation13 + $0x78] sm:$0xff] (!%p1272_p10) }
 0x464   : > { %v1282_v26 = vmul.f32 (!%p1272_p10), 0.70710677, %v1280_v25  ;;  %v1950_v47 = vpack.c.bf16 (!%p1272_p10), %v1329_v50, %v1328_v49  ;;  %v1281_v52 = vmul.f32 (!%p1272_p10), 0.5, %v1280_v25 }
 0x465   : > { %1933 = vmatpush3.bf16.msra.mxu0 (!%p1272_p10), %v1932_v22  ;;  %v1674_v12 = vld [vmem:[%s3898_s0] ss:$0 sm:$0xff] (!%p1272_p10) }
 0x466   : > { %1934 = vmatprep.subr.bf16.mxu0 %v2713_v18  ;;  %v1673_v29 = vclamps-f32 %v1282_v26, 3.832507 }
 0x468   : > { %v1285_v30 = vmul.f32 %v1673_v29, %v1673_v29 }
 0x469   : > { %1936 = vmatpush3.bf16.msra.mxu0 %v1935_v41 }
 0x46a   : > { %1937 = vmatprep.subr.bf16.mxu0 %v2713_v18  ;;  %v1286_v0 = vmul.f32 0.0, %v1285_v30 }
 0x46c   : > { %v1287_v33 = vadd.f32 0.00022905065, %v1286_v0  ;;  %v1296_v34 = vadd.f32 -1.1791603e-07, %v1286_v0 }
 0x46d   : > { %1939 = vmatpush3.bf16.msra.mxu0 %v1938_v61 }
 0x46e   : > { %1940 = vmatprep.subr.bf16.mxu0 %v2713_v18  ;;  %v1288_v36 = vmul.f32 %v1287_v33, %v1285_v30  ;;  %v1297_v37 = vmul.f32 %v1296_v34, %v1285_v30 }
 0x470   : > { %v1298_v5 = vadd.f32 2.3547966e-05, %v1297_v37  ;;  %v1289_v40 = vadd.f32 0.003408291, %v1288_v36 }
 0x471   : > { %1942 = vmatpush3.bf16.msra.mxu0 %v1941_v32 }
 0x472   : > { %1943 = vmatprep.subr.bf16.mxu0 %v2713_v18  ;;  %v1299_v44 = vmul.f32 %v1298_v5, %v1285_v30  ;;  %v1290_v53 = vmul.f32 %v1289_v40, %v1285_v30 }
 0x474   : > { %v1300_v48 = vadd.f32 0.0010179626, %v1299_v44  ;;  %v1291_v7 = vadd.f32 0.050955694, %v1290_v53 }
 0x475   : > { %1945 = vmatpush3.bf16.msra.mxu0 %v1944_v38 }
 0x476   : > { %1946 = vmatprep.subr.bf16.mxu0 %v2713_v18  ;;  %v1301_v55 = vmul.f32 %v1300_v48, %v1285_v30  ;;  %v1292_v10 = vmul.f32 %v1291_v7, %v1285_v30 }
 0x478   : > { %v1302_v57 = vadd.f32 0.01407047, %v1301_v55  ;;  %v1293_v63 = vadd.f32 0.18520832, %v1292_v10 }
 0x479   : > { %1948 = vmatpush3.bf16.msra.mxu0 %v1947_v46 }
 0x47a   : > { %1949 = vmatprep.subr.bf16.mxu0 %v2713_v18  ;;  %v1303_v58 = vmul.f32 %v1302_v57, %v1285_v30  ;;  %v1294_v51 = vmul.f32 %v1293_v63, %v1285_v30 }
 0x47c   : > { %v1304_v59 = vadd.f32 0.11098505, %v1303_v58  ;;  %v1295_v3 = vadd.f32 1.1283791, %v1294_v51 }
 0x47d   : > { %1951 = vmatpush3.bf16.msra.mxu0 %v1950_v47 }
 0x47e   : > { %v1305_v60 = vmul.f32 %v1304_v59, %v1285_v30  ;;  %v1309_v6 = vmul.f32 %v1673_v29, %v1295_v3 }
 0x480   : > { %v1306_v62 = vadd.f32 0.49746925, %v1305_v60 }
 0x482   : > { %v1307_v1 = vmul.f32 %v1306_v62, %v1285_v30 }
 0x484   : > { %v1308_v2 = vadd.f32 1.0, %v1307_v1 }
 0x486   : > { %2296 = vrcp.f32 %v1308_v2 }
 0x490   : > { %v2297_v8 = vpop.eup %2296 }
 0x491   : > { %v1311_v9 = vmul.f32 %v2297_v8, %v1309_v6 }
 0x493   : > { %v1312_v23 = vadd.f32 1.0, %v1311_v9 }
 0x495   : > { %v1313_v11 = vmul.f32 %v1312_v23, %v1281_v52 }
 0x497   : > { %1870 = vmatmul.mubr.f32.vlgmr.msra.gmra.mrb[0].mxu0 %v1313_v11 }
 0x56a   : > { %v1403_v14 = vpop.f32.mrb[0].mxu0 }
 0x56b   : > { %v1404_v13 = vadd.f32 %v1674_v12, %v1403_v14  ;;  %v1871_v16 = vpop.f32.mrb[1].mxu0 }
 0x56d   : > { %1407 = vst [vmem:[%s3445_s28] sm:$0xff] %v1404_v13 }
 0x56e PF: > { %s3899_s9 = sld [smem:[#allocation46_spill]]  ;;  %s3901_s8 = sld [smem:[#allocation49_spill]] }
 0x56f   : > { %s3902_s2 = sld [smem:[#allocation68_spill]]  ;;  %s1422_s18 = sshll.u32 %s3445_s28, 4  ;;  %s1423_s18 = int_to_ptr.vmem [resolvable:$true] %s1422_s18 }
 0x570   : > { %s1409_s16 = scalar_lea.sflag [#allocation7], %s621_s12  ;;  %s2468_s4 = scalar_lea.vmem %s1423_s18, 128 }
 0x571   : > { %p2469_p6 = scmp.ne.s32.totalorder %s1423_s18, %s2468_s4  ;;  %s2716_s27 = smov [#allocation14]  }
 0x572   : > { %s2472_s17 = sshll.u32 %s2716_s27, 4  ;;  %s2473_s17 = int_to_ptr.vmem [resolvable:$false] %s2472_s17 }
 0x573   : > { %s2474_s13 = scalar_lea.vmem %s2473_s17, 256  ;;  %p2475_p3 = scmp.lt.s32.totalorder %s1423_s18, %s2473_s17 }
 0x574   : > { %s1676_s11 = sshll.u32 %s3899_s9, 7  ;;  %p3903_p8 = scmp.ne.s32.totalorder %s3901_s8, 0 }
 0x575   : > { %s3614_s5 = scalar_lea.hbm %s3902_s2, %s1676_s11  ;;  %p2476_p5 = scmp.lt.s32.totalorder %s2474_s13, %s2468_s4 }
 0x576   : > { %p2470_p13 = pnand %p2469_p6, %p3903_p8 }
 0x577   : > { %p2477_p4 = por %p2476_p5, %p2475_p3 }
 0x578   : > { %p2471_p0 = pneg %p2470_p13 }
 0x57a   : > { %p2478_p7 = pnand %p2477_p4, %p2471_p0 }
 0x57c   : > { %2481 = shalt.err (!%p2478_p7)
}
 0x57d   : > { %s2482_s12 = scalar_lea.hbm %s3614_s5, 128  ;;  %s2486_s14 = scalar_lea.hbm %s3902_s2, 384 }
 0x57e   : > { %p2483_p2 = scmp.ne.s32.totalorder %s3614_s5, %s2482_s12  ;;  %p2487_p12 = scmp.lt.u32.totalorder %s3614_s5, %s3902_s2 }
 0x57f   : > { %p2488_p1 = scmp.lt.u32.totalorder %s2486_s14, %s2482_s12  ;;  %p2490_p6 = scmp.lt.u32.totalorder %s2482_s12, %s3614_s5 }
 0x580   : > { %p2484_p11 = pnand %p2483_p2, %p3903_p8 }
 0x581   : > { %p2489_p10 = por %p2488_p1, %p2487_p12 }
 0x582   : > { %p2485_p9 = pneg %p2484_p11 }
 0x583   : > { %p2491_p13 = por %p2490_p6, %p2489_p10 }
 0x585   : > { %p2492_p0 = pnand %p2491_p13, %p2485_p9 }
 0x587   : > { %2495 = shalt.err (!%p2492_p0)
}
 0x588   : > { %1980 = dma.vmem_to_hbm [thread:$0]  (%p3903_p8), %s1423_s18, 128, %s3614_s5, %s1409_s16  }
 0x589 PF: > { %s3904_s9 = sld [smem:[#allocation34_spill]]  ;;  %p2018_p3 = scmp.ge.s32.totalorder %s2696_s22, 2 }
 0x58a   : > { %s3905_s7 = sld [smem:[#allocation50_spill]] }
 0x58f   : > { %s1434_s11 = sand.u32 1, %s3904_s9  }
 0x590   : > { %p3906_p5 = scmp.ne.s32.totalorder %s3905_s7, 0  ;;  %s1435_s10 = scalar_lea.sflag [#allocation7], %s1434_s11 }
 0x592   : > { %p2012_p4 = pnand %p2018_p3, %p3906_p5 }
 0x594   : > { %2607 = dma.done.wait (!%p2012_p4), %s1435_s10, 128  }
 0x595   : > { %2609 = vsyncadd (!%p2012_p4), %s1435_s10, 4294967168  ;;  %s39_s22 = sadd.s32 1, %s2696_s22   ;;  %s3908_s0 = sld [smem:[#allocation35_spill]] }
 0x596   : > { %p3641_p7 = scmp.ge.s32.totalorder %s39_s22, 14   ;;  %s3909_s8 = sld [smem:[#allocation36_spill]] }
 0x597   : > { %s3910_s5 = sld [smem:[#allocation56_spill]]  ;;  %s3912_s26 = sld [smem:[#allocation39_spill]] }
 0x598   : > { %s3911_s18 = sld [smem:[#allocation38_spill]]  ;;  %s3913_s16 = smov %s3291_s24 }
 0x599   : > { %s3914_s4 = smov %s3268_s1  ;;  %s3915_s10 = sld [smem:[#allocation41_spill]] }
 0x59a   : > { %s3916_s11 = sld [smem:[#allocation42_spill]]  ;;  %s3917_s12 = sld [smem:[#allocation57_spill]] }
 0x59b   : > { %s3918_s13 = sld [smem:[#allocation43_spill]]  ;;  %s3919_s17 = sld [smem:[#allocation60_spill]] }
 0x59c   : > { %s3920_s1 = smov %s3909_s8  ;;  %s3921_s6 = sld [smem:[#allocation47_spill]] }
 0x59d   : > { %s3922_s24 = smov %s3910_s5  ;;  %s3923_s9 = smov %s3800_s25 }
 0x59e   : > { %s3924_s25 = smov %s3911_s18  ;;  %s3925_s7 = sld [smem:[#allocation53_spill]] }
 0x59f   : > { %s3926_s2 = sld [smem:[#allocation54_spill]]  ;;  %s3927_s27 = smov %s3913_s16 }
 0x5a0   : > { %s3928_s28 = smov %s2640_s29  ;;  %s3930_s29 = smov %s2644_s30 }
 0x5a1   : > { %s3931_s30 = smov %s3914_s4  ;;  %s3932_s14 = smov %s2668_s15 }
 0x5a2   : > { %s3933_s15 = smov %s3919_s17  ;;  %s3934_s16 = smov %s2684_s19 }
 0x5a3   : > { %s3935_s17 = smov %s2688_s20  ;;  %s3936_s18 = smov %s3921_s6 }
 0x5a4   : > { %s3937_s19 = smov %s3923_s9  ;;  %s3938_s20 = smov %s3925_s7 }
 0x5a5   : > { %s3939_s21 = smov %s3926_s2  ;;  %38 = sbr.rel (!%p3641_p7) target bundleno = 43 (0x2b), region = 149 }
 0x5ac   :  { %1440 = vsyncpa [#allocation6], 1 }
 0x5ad   :  { %1442 = vsyncpa [#allocation6 + $0x1], 1 }
 0x5ae   :  { %1443 = vsyncpa [#allocation9], 1 }
 0x5af   :  { %1445 = vsyncpa [#allocation9 + $0x1], 1 }
 0x5b0   :  { %1446 = vsyncpa [#allocation12], 1 }
 0x5b1   :  { %1448 = vsyncpa [#allocation12 + $0x1], 1 }
 0x5b2   :  { %1449 = vsyncpa [#allocation7], 1 }
 0x5b3   :  { %1451 = vsyncpa [#allocation7 + $0x1], 1 }

</bundles_post_ra>
